<compile_context>
chip_gen: v6e
topology: v6e:2x2x1
jax: 0.10.0
libtpu: 0.0.40
codegen_flags: <defaults>
</compile_context>

<pallas_src>
import functools

import jax
import jax.numpy as jnp
from jax.experimental import pallas as pl
from jax.experimental.pallas import tpu as pltpu


def _round_up(n, m):
    return ((n + m - 1) // m) * m


# ---------------------------------------------------------------------------
# Kernel
# ---------------------------------------------------------------------------
def up_kernel(x_ref, z_ref,
              w1_ref, b1_ref,
              w2a_ref, w2b_ref, b2_ref,
              w3_ref, b3_ref,
              w4_ref, b4_ref,
              o_ref):
    cdt = x_ref.dtype  # bf16 compute dtype feeding the MXU
    x = x_ref[...]
    z = z_ref[...]

    # net1: Linear -> (Dropout = identity) -> ReLU
    out1 = jnp.dot(x, w1_ref[...], preferred_element_type=jnp.float32) + b1_ref[...]
    out1 = jnp.maximum(out1, 0.0).astype(cdt)

    # net2 layer 1 on concat([out1, z]): split-weight formulation (exact)
    h2 = (jnp.dot(out1, w2a_ref[...], preferred_element_type=jnp.float32)
          + jnp.dot(z, w2b_ref[...], preferred_element_type=jnp.float32)
          + b2_ref[...])
    h2 = jnp.maximum(h2, 0.0).astype(cdt)

    # net2 layer 2
    h3 = jnp.dot(h2, w3_ref[...], preferred_element_type=jnp.float32) + b3_ref[...]
    h3 = jnp.maximum(h3, 0.0).astype(cdt)

    # net2 layer 3
    out = jnp.dot(h3, w4_ref[...], preferred_element_type=jnp.float32) + b4_ref[...]
    o_ref[...] = jnp.maximum(out, 0.0).astype(o_ref.dtype)


# ---------------------------------------------------------------------------
# Wrapper
# ---------------------------------------------------------------------------
def prepare_params(params, compute_dtype=jnp.bfloat16):
    """One-time parameter prep (NOT per forward call): split W2 along its
    input axis (concat fold), reshape biases to (1, D) rows, cast weights to
    bf16.  Biases stay f32 (added straight onto the f32 accumulator)."""
    w1, b1, w2, b2, w3, b3, w4, b4 = params
    D = w1.shape[1]
    return (w1.astype(compute_dtype),
            b1.reshape(1, -1).astype(jnp.float32),
            w2[:D, :].astype(compute_dtype),   # multiplies out1
            w2[D:, :].astype(compute_dtype),   # multiplies z
            b2.reshape(1, -1).astype(jnp.float32),
            w3.astype(compute_dtype),
            b3.reshape(1, -1).astype(jnp.float32),
            w4.astype(compute_dtype),
            b4.reshape(1, -1).astype(jnp.float32))


@functools.partial(jax.jit, static_argnames=("tb",))
def up_forward(x, z, prepared, tb=256):
    """x: (B, input_dim) f32, z: (B, output_dim) f32 -> (B, output_dim) f32."""
    (w1, b1, w2a, w2b, b2, w3, b3, w4, b4) = prepared
    B, input_dim = x.shape
    D = w1.shape[1]
    cdt = w1.dtype

    # Batch tile: multiple of 8 sublanes; 256 rows keeps the 2x256 MXU fed on
    # v6e/v7x.  Clamp to the (sublane-padded) batch so tiny batches still work.
    tb = max(8, min(tb, _round_up(B, 8)))
    grid_n = pl.cdiv(B, tb)
    Bp = grid_n * tb

    xb = x.astype(cdt)
    zb = z.astype(cdt)
    if Bp != B:
        xb = jnp.pad(xb, ((0, Bp - B), (0, 0)))
        zb = jnp.pad(zb, ((0, Bp - B), (0, 0)))

    row = lambda shape: pl.BlockSpec(shape, lambda i: (i, 0))   # batch-tiled
    rep = lambda shape: pl.BlockSpec(shape, lambda i: (0, 0))   # VMEM-resident

    itemsize = jnp.dtype(cdt).itemsize
    flops = 2 * Bp * (input_dim * D + 4 * D * D)
    weight_bytes = (input_dim * D + 3 * D * D) * itemsize + 4 * D * 4
    io_bytes = (Bp * input_dim + Bp * D) * itemsize + Bp * D * 4
    cost = pl.CostEstimate(flops=flops, transcendentals=0,
                           bytes_accessed=weight_bytes + io_bytes)

    out = pl.pallas_call(
        up_kernel,
        out_shape=jax.ShapeDtypeStruct((Bp, D), jnp.float32),
        grid_spec=pl.GridSpec(
            grid=(grid_n,),
            in_specs=[
                row((tb, input_dim)),          # x       (pipelined per tile)
                row((tb, D)),                  # z       (pipelined per tile)
                rep((input_dim, D)),           # W1      (resident)
                rep((1, D)),                   # b1
                rep((D, D)),                   # W2a
                rep((D, D)),                   # W2b
                rep((1, D)),                   # b2
                rep((D, D)),                   # W3
                rep((1, D)),                   # b3
                rep((D, D)),                   # W4
                rep((1, D)),                   # b4
            ],
            out_specs=row((tb, D)),
        ),
        compiler_params=pltpu.CompilerParams(
            dimension_semantics=("parallel",),        # megacore split on v7x
            vmem_limit_bytes=32 * 1024 * 1024),       # safe on v7x's 64 MiB VMEM
        cost_estimate=cost,
    )(xb, zb, w1, b1, w2a, w2b, b2, w3, b3, w4, b4)

    return out[:B] if Bp != B else out


# ---------------------------------------------------------------------------
# Params + references
# ---------------------------------------------------------------------------
def init_params(key, input_dim, output_dim):
    """Deterministic synthetic parameter init (PyTorch Linear-style init,
    stored transposed as (in, out))."""
    ks = jax.random.split(key, 8)

    def lin(kw, kb, fan_in, fan_out):
        bound = 1.0 / jnp.sqrt(fan_in)
        w = jax.random.uniform(kw, (fan_in, fan_out), jnp.float32, -bound, bound)
        b = jax.random.uniform(kb, (fan_out,), jnp.float32, -bound, bound)
        return w, b

    w1, b1 = lin(ks[0], ks[1], input_dim, output_dim)       # net1 Linear
    w2, b2 = lin(ks[2], ks[3], output_dim * 2, output_dim)  # net2 Linear #1
    w3, b3 = lin(ks[4], ks[5], output_dim, output_dim)      # net2 Linear #2
    w4, b4 = lin(ks[6], ks[7], output_dim, output_dim)      # net2 Linear #3
    return (w1, b1, w2, b2, w3, b3, w4, b4)


def up_reference_f32(x, z, params):
    """Pure f32 reference mirroring the PyTorch module in eval mode."""
    w1, b1, w2, b2, w3, b3, w4, b4 = params
    out1 = jax.nn.relu(x @ w1 + b1)
    cat = jnp.concatenate([out1, z], axis=1)
    h2 = jax.nn.relu(cat @ w2 + b2)
    h3 = jax.nn.relu(h2 @ w3 + b3)
    return jax.nn.relu(h3 @ w4 + b4)


def up_reference_mixed(x, z, params, compute_dtype=jnp.bfloat16):
    """Reference mirroring the kernel's mixed precision (bf16 MXU inputs,
    f32 accumulation, f32 bias+ReLU, bf16 re-cast between layers)."""
    w1, b1, w2, b2, w3, b3, w4, b4 = params
    D = w1.shape[1]
    cdt = compute_dtype
    xd, zd = x.astype(cdt), z.astype(cdt)
    w1d = w1.astype(cdt)
    w2ad, w2bd = w2[:D, :].astype(cdt), w2[D:, :].astype(cdt)
    w3d, w4d = w3.astype(cdt), w4.astype(cdt)

    out1 = jax.nn.relu(
        jnp.dot(xd, w1d, preferred_element_type=jnp.float32) + b1).astype(cdt)
    h2 = jax.nn.relu(
        jnp.dot(out1, w2ad, preferred_element_type=jnp.float32)
        + jnp.dot(zd, w2bd, preferred_element_type=jnp.float32) + b2).astype(cdt)
    h3 = jax.nn.relu(
        jnp.dot(h2, w3d, preferred_element_type=jnp.float32) + b3).astype(cdt)
    return jax.nn.relu(jnp.dot(h3, w4d, preferred_element_type=jnp.float32) + b4)


# ---------------------------------------------------------------------------
# Main
# ---------------------------------------------------------------------------
if __name__ == "__main__":
    # output_dim is a multiple of 128 -> lane-dense output stores (no vst.msk);
    # B spans two batch tiles so the pipelined grid is actually exercised.
    B, input_dim, output_dim = 512, 64, 128

    key = jax.random.PRNGKey(0)
    kx, kz, kp = jax.random.split(key, 3)
    x = jax.random.normal(kx, (B, input_dim), jnp.float32)
    z = jax.random.normal(kz, (B, output_dim), jnp.float32)
    params = init_params(kp, input_dim, output_dim)

    prepared = prepare_params(params)          # one-time: split W2, bf16 cast
    out = up_forward(x, z, prepared, tb=256)
    out = jax.block_until_ready(out)
    assert out.shape == (B, output_dim)

    # Tight check vs a reference that mirrors the kernel's mixed precision.
    ref_mixed = up_reference_mixed(x, z, params)
    assert jnp.allclose(out, ref_mixed, atol=2e-3, rtol=2e-3), \
        float(jnp.max(jnp.abs(out - ref_mixed)))

    # Loose sanity check vs the pure-f32 module semantics (bf16 rounding only).
    ref_f32 = up_reference_f32(x, z, params)
    assert jnp.allclose(out, ref_f32, atol=5e-2, rtol=5e-2)

    # TODO(synk): nn.Dropout is treated as identity (inference mode only).
    print("KERNEL_OK")
</pallas_src>

<mosaic_0001>
module attributes {stable_mosaic.version = 11 : i64} {
  func.func @up_kernel(%arg0: i32, %arg1: memref<256x64xbf16, #tpu.memory_space<vmem>>, %arg2: memref<256x128xbf16, #tpu.memory_space<vmem>>, %arg3: memref<64x128xbf16, #tpu.memory_space<vmem>>, %arg4: memref<1x128xf32, #tpu.memory_space<vmem>>, %arg5: memref<128x128xbf16, #tpu.memory_space<vmem>>, %arg6: memref<128x128xbf16, #tpu.memory_space<vmem>>, %arg7: memref<1x128xf32, #tpu.memory_space<vmem>>, %arg8: memref<128x128xbf16, #tpu.memory_space<vmem>>, %arg9: memref<1x128xf32, #tpu.memory_space<vmem>>, %arg10: memref<128x128xbf16, #tpu.memory_space<vmem>>, %arg11: memref<1x128xf32, #tpu.memory_space<vmem>>, %arg12: memref<256x128xf32, #tpu.memory_space<vmem>>) attributes {dimension_semantics = [#tpu.dimension_semantics<parallel>], iteration_bounds = array<i64: 2>, scalar_prefetch = 0 : i64, scratch_operands = 0 : i64, tpu.core_type = #tpu.core_type<tc>, window_params = [{transform_indices = @transform_0, window_bounds = array<i64: 256, 64>}, {transform_indices = @transform_1, window_bounds = array<i64: 256, 128>}, {pipeline_mode = #tpu.pipeline_mode<synchronous>, transform_indices = @transform_2, window_bounds = array<i64: 64, 128>}, {pipeline_mode = #tpu.pipeline_mode<synchronous>, transform_indices = @transform_3, window_bounds = array<i64: 1, 128>}, {pipeline_mode = #tpu.pipeline_mode<synchronous>, transform_indices = @transform_4, window_bounds = array<i64: 128, 128>}, {pipeline_mode = #tpu.pipeline_mode<synchronous>, transform_indices = @transform_5, window_bounds = array<i64: 128, 128>}, {pipeline_mode = #tpu.pipeline_mode<synchronous>, transform_indices = @transform_6, window_bounds = array<i64: 1, 128>}, {pipeline_mode = #tpu.pipeline_mode<synchronous>, transform_indices = @transform_7, window_bounds = array<i64: 128, 128>}, {pipeline_mode = #tpu.pipeline_mode<synchronous>, transform_indices = @transform_8, window_bounds = array<i64: 1, 128>}, {pipeline_mode = #tpu.pipeline_mode<synchronous>, transform_indices = @transform_9, window_bounds = array<i64: 128, 128>}, {pipeline_mode = #tpu.pipeline_mode<synchronous>, transform_indices = @transform_10, window_bounds = array<i64: 1, 128>}, {transform_indices = @transform_11, window_bounds = array<i64: 256, 128>}]} {
    %c0 = arith.constant 0 : index
    %c0_0 = arith.constant 0 : index
    %0 = vector.load %arg1[%c0, %c0_0] : memref<256x64xbf16, #tpu.memory_space<vmem>>, vector<256x64xbf16>
    %c0_1 = arith.constant 0 : index
    %c0_2 = arith.constant 0 : index
    %1 = vector.load %arg2[%c0_1, %c0_2] : memref<256x128xbf16, #tpu.memory_space<vmem>>, vector<256x128xbf16>
    %c0_3 = arith.constant 0 : index
    %c0_4 = arith.constant 0 : index
    %2 = vector.load %arg3[%c0_3, %c0_4] : memref<64x128xbf16, #tpu.memory_space<vmem>>, vector<64x128xbf16>
    %cst = arith.constant dense<0.000000e+00> : vector<256x128xf32>
    %3 = tpu.matmul %0, %2, %cst {dimension_numbers = #tpu.dot_dimension_numbers<[1], [0], [0], [1], [0, 0, 1, 1], [], []>} : vector<256x64xbf16>, vector<64x128xbf16>, vector<256x128xf32> -> vector<256x128xf32>
    %c0_5 = arith.constant 0 : index
    %c0_6 = arith.constant 0 : index
    %4 = vector.load %arg4[%c0_5, %c0_6] : memref<1x128xf32, #tpu.memory_space<vmem>>, vector<1x128xf32>
    %5 = vector.broadcast %4 : vector<1x128xf32> to vector<256x128xf32>
    %6 = arith.addf %3, %5 : vector<256x128xf32>
    %cst_7 = arith.constant 0.000000e+00 : f32
    %7 = vector.broadcast %cst_7 : f32 to vector<256x128xf32>
    %8 = arith.maximumf %6, %7 : vector<256x128xf32>
    %9 = arith.truncf %8 : vector<256x128xf32> to vector<256x128xbf16>
    %c0_8 = arith.constant 0 : index
    %c0_9 = arith.constant 0 : index
    %10 = vector.load %arg5[%c0_8, %c0_9] : memref<128x128xbf16, #tpu.memory_space<vmem>>, vector<128x128xbf16>
    %cst_10 = arith.constant dense<0.000000e+00> : vector<256x128xf32>
    %11 = tpu.matmul %9, %10, %cst_10 {dimension_numbers = #tpu.dot_dimension_numbers<[1], [0], [0], [1], [0, 0, 1, 1], [], []>} : vector<256x128xbf16>, vector<128x128xbf16>, vector<256x128xf32> -> vector<256x128xf32>
    %c0_11 = arith.constant 0 : index
    %c0_12 = arith.constant 0 : index
    %12 = vector.load %arg6[%c0_11, %c0_12] : memref<128x128xbf16, #tpu.memory_space<vmem>>, vector<128x128xbf16>
    %cst_13 = arith.constant dense<0.000000e+00> : vector<256x128xf32>
    %13 = tpu.matmul %1, %12, %cst_13 {dimension_numbers = #tpu.dot_dimension_numbers<[1], [0], [0], [1], [0, 0, 1, 1], [], []>} : vector<256x128xbf16>, vector<128x128xbf16>, vector<256x128xf32> -> vector<256x128xf32>
    %14 = arith.addf %11, %13 : vector<256x128xf32>
    %c0_14 = arith.constant 0 : index
    %c0_15 = arith.constant 0 : index
    %15 = vector.load %arg7[%c0_14, %c0_15] : memref<1x128xf32, #tpu.memory_space<vmem>>, vector<1x128xf32>
    %16 = vector.broadcast %15 : vector<1x128xf32> to vector<256x128xf32>
    %17 = arith.addf %14, %16 : vector<256x128xf32>
    %cst_16 = arith.constant 0.000000e+00 : f32
    %18 = vector.broadcast %cst_16 : f32 to vector<256x128xf32>
    %19 = arith.maximumf %17, %18 : vector<256x128xf32>
    %20 = arith.truncf %19 : vector<256x128xf32> to vector<256x128xbf16>
    %c0_17 = arith.constant 0 : index
    %c0_18 = arith.constant 0 : index
    %21 = vector.load %arg8[%c0_17, %c0_18] : memref<128x128xbf16, #tpu.memory_space<vmem>>, vector<128x128xbf16>
    %cst_19 = arith.constant dense<0.000000e+00> : vector<256x128xf32>
    %22 = tpu.matmul %20, %21, %cst_19 {dimension_numbers = #tpu.dot_dimension_numbers<[1], [0], [0], [1], [0, 0, 1, 1], [], []>} : vector<256x128xbf16>, vector<128x128xbf16>, vector<256x128xf32> -> vector<256x128xf32>
    %c0_20 = arith.constant 0 : index
    %c0_21 = arith.constant 0 : index
    %23 = vector.load %arg9[%c0_20, %c0_21] : memref<1x128xf32, #tpu.memory_space<vmem>>, vector<1x128xf32>
    %24 = vector.broadcast %23 : vector<1x128xf32> to vector<256x128xf32>
    %25 = arith.addf %22, %24 : vector<256x128xf32>
    %cst_22 = arith.constant 0.000000e+00 : f32
    %26 = vector.broadcast %cst_22 : f32 to vector<256x128xf32>
    %27 = arith.maximumf %25, %26 : vector<256x128xf32>
    %28 = arith.truncf %27 : vector<256x128xf32> to vector<256x128xbf16>
    %c0_23 = arith.constant 0 : index
    %c0_24 = arith.constant 0 : index
    %29 = vector.load %arg10[%c0_23, %c0_24] : memref<128x128xbf16, #tpu.memory_space<vmem>>, vector<128x128xbf16>
    %cst_25 = arith.constant dense<0.000000e+00> : vector<256x128xf32>
    %30 = tpu.matmul %28, %29, %cst_25 {dimension_numbers = #tpu.dot_dimension_numbers<[1], [0], [0], [1], [0, 0, 1, 1], [], []>} : vector<256x128xbf16>, vector<128x128xbf16>, vector<256x128xf32> -> vector<256x128xf32>
    %c0_26 = arith.constant 0 : index
    %c0_27 = arith.constant 0 : index
    %31 = vector.load %arg11[%c0_26, %c0_27] : memref<1x128xf32, #tpu.memory_space<vmem>>, vector<1x128xf32>
    %32 = vector.broadcast %31 : vector<1x128xf32> to vector<256x128xf32>
    %33 = arith.addf %30, %32 : vector<256x128xf32>
    %cst_28 = arith.constant 0.000000e+00 : f32
    %34 = vector.broadcast %cst_28 : f32 to vector<256x128xf32>
    %35 = arith.maximumf %33, %34 : vector<256x128xf32>
    %c0_29 = arith.constant 0 : index
    %c0_30 = arith.constant 0 : index
    %36 = vector.load %arg12[%c0_29, %c0_30] : memref<256x128xf32, #tpu.memory_space<vmem>>, vector<256x128xf32>
    tpu.vector_store %arg12[%c0_29, %c0_30], %35 {strides = array<i32>} : memref<256x128xf32, #tpu.memory_space<vmem>>, vector<256x128xf32>,
    return
  }
  func.func @transform_0(%arg0: i32) -> (i32, i32) {
    %c0_i32 = arith.constant 0 : i32
    %c0_i32_0 = arith.constant 0 : i32
    return %arg0, %c0_i32 : i32, i32
  }
  func.func @transform_1(%arg0: i32) -> (i32, i32) {
    %c0_i32 = arith.constant 0 : i32
    %c0_i32_0 = arith.constant 0 : i32
    return %arg0, %c0_i32 : i32, i32
  }
  func.func @transform_2(%arg0: i32) -> (i32, i32) {
    %c0_i32 = arith.constant 0 : i32
    %c0_i32_0 = arith.constant 0 : i32
    %c0_i32_1 = arith.constant 0 : i32
    return %c0_i32, %c0_i32_0 : i32, i32
  }
  func.func @transform_3(%arg0: i32) -> (i32, i32) {
    %c0_i32 = arith.constant 0 : i32
    %c0_i32_0 = arith.constant 0 : i32
    %c0_i32_1 = arith.constant 0 : i32
    return %c0_i32, %c0_i32_0 : i32, i32
  }
  func.func @transform_4(%arg0: i32) -> (i32, i32) {
    %c0_i32 = arith.constant 0 : i32
    %c0_i32_0 = arith.constant 0 : i32
    %c0_i32_1 = arith.constant 0 : i32
    return %c0_i32, %c0_i32_0 : i32, i32
  }
  func.func @transform_5(%arg0: i32) -> (i32, i32) {
    %c0_i32 = arith.constant 0 : i32
    %c0_i32_0 = arith.constant 0 : i32
    %c0_i32_1 = arith.constant 0 : i32
    return %c0_i32, %c0_i32_0 : i32, i32
  }
  func.func @transform_6(%arg0: i32) -> (i32, i32) {
    %c0_i32 = arith.constant 0 : i32
    %c0_i32_0 = arith.constant 0 : i32
    %c0_i32_1 = arith.constant 0 : i32
    return %c0_i32, %c0_i32_0 : i32, i32
  }
  func.func @transform_7(%arg0: i32) -> (i32, i32) {
    %c0_i32 = arith.constant 0 : i32
    %c0_i32_0 = arith.constant 0 : i32
    %c0_i32_1 = arith.constant 0 : i32
    return %c0_i32, %c0_i32_0 : i32, i32
  }
  func.func @transform_8(%arg0: i32) -> (i32, i32) {
    %c0_i32 = arith.constant 0 : i32
    %c0_i32_0 = arith.constant 0 : i32
    %c0_i32_1 = arith.constant 0 : i32
    return %c0_i32, %c0_i32_0 : i32, i32
  }
  func.func @transform_9(%arg0: i32) -> (i32, i32) {
    %c0_i32 = arith.constant 0 : i32
    %c0_i32_0 = arith.constant 0 : i32
    %c0_i32_1 = arith.constant 0 : i32
    return %c0_i32, %c0_i32_0 : i32, i32
  }
  func.func @transform_10(%arg0: i32) -> (i32, i32) {
    %c0_i32 = arith.constant 0 : i32
    %c0_i32_0 = arith.constant 0 : i32
    %c0_i32_1 = arith.constant 0 : i32
    return %c0_i32, %c0_i32_0 : i32, i32
  }
  func.func @transform_11(%arg0: i32) -> (i32, i32) {
    %c0_i32 = arith.constant 0 : i32
    %c0_i32_0 = arith.constant 0 : i32
    return %arg0, %c0_i32 : i32, i32
  }
}

</mosaic_0001>

<bundles_post_ra>
// kernel: up_forward.1
= control target key start
LH: loop header
LB: loop body
LE: loop exit
PB: predicated region body
PF: predicated region fallthrough
CT: control target
= control target key end

     0   :  { %s3342_s0 = inlined_call_operand.vmem [shape: bf16[512,64], index: 0, kind: input, shape index: {}]   ;;  %s3343_s1 = inlined_call_operand.vmem [shape: bf16[512,128], index: 1, kind: input, shape index: {}]   ;;  %s3344_s2 = inlined_call_operand.vmem [shape: bf16[64,128], index: 2, kind: input, shape index: {}]   ;;  %s3345_s3 = inlined_call_operand.vmem [shape: f32[1,128], index: 3, kind: input, shape index: {}]   ;;  %s3346_s4 = inlined_call_operand.vmem [shape: bf16[128,128], index: 4, kind: input, shape index: {}]   ;;  %s3347_s5 = inlined_call_operand.vmem [shape: bf16[128,128], index: 5, kind: input, shape index: {}]   ;;  %s3348_s6 = inlined_call_operand.vmem [shape: f32[1,128], index: 6, kind: input, shape index: {}]   ;;  %s3349_s7 = inlined_call_operand.vmem [shape: bf16[128,128], index: 7, kind: input, shape index: {}]   ;;  %s3350_s8 = inlined_call_operand.vmem [shape: f32[1,128], index: 8, kind: input, shape index: {}]   ;;  %s3351_s9 = inlined_call_operand.vmem [shape: bf16[128,128], index: 9, kind: input, shape index: {}]   ;;  %s3352_s10 = inlined_call_operand.vmem [shape: f32[1,128], index: 10, kind: input, shape index: {}]   ;;  %s3353_s11 = inlined_call_operand.hbm [shape: f32[512,128], index: 11, kind: output, shape index: {}]  }
   0x1   :  { %3356 = sst [smem:[#allocation7_spill]] %s3342_s0 }
   0x2   :  { %3357 = sst [smem:[#allocation8_spill]] %s3344_s2 }
   0x3   :  { %16 = vsyncpa [#allocation3], 0 }
   0x4   :  { %18 = vsyncpa [#allocation3 + $0x1], 0  ;;  %s2842_s17 = smov 0   ;;  %s2844_s18 = smov 0  }
   0x5   :  { %s2846_s19 = smov 0   ;;  %s2848_s20 = smov 0  }
   0x6 LB: > { %3358 = sst [smem:[#allocation5_spill]] %s2773_s19  ;;  %s2863_s21 = sadd.s32 4294967295, %s2777_s20   ;;  %s2777_s20 = sphi %s2848_s20, %s3369_s20   ;;  %s2773_s19 = sphi %s2846_s19, %s3366_s19   ;;  %s2769_s18 = sphi %s2844_s18, %s3368_s18   ;;  %s2765_s17 = sphi %s2842_s17, %s3367_s17  }
   0x7   : > { %s2149_s22 = sadd.s32 4294967294, %s2777_s20   ;;  %s2867_s23 = sadd.s32 1, %s2777_s20  }
   0x8   : > { %s272_s24 = sadd.s32 1, %s2773_s19  ;;  %s269_s25 = ssub.s32 %s2777_s20, %s2867_s23 }
   0x9   : > { %p282_p0 = scmp.ne.s32.totalorder %s2773_s19, %s2769_s18  ;;  %p270_p1 = scmp.eq.s32.totalorder %s269_s25, 0 }
   0xa   : > { %p283_p2 = scmp.eq.s32.totalorder %s2863_s21, 1  ;;  %p288_p3 = scmp.ne.s32.totalorder %s2769_s18, %s2765_s17 }
   0xb   : > { %p289_p4 = scmp.eq.s32.totalorder %s2149_s22, 1  ;;  %p2152_p7 = scmp.ge.s32.totalorder %s2777_s20, 1 }
   0xc   : > { %s2878_s26 = scalar_select %p270_p1, %s2773_s19, %s272_s24  }
   0xd   : > { %p2880_p5 = por %p283_p2, %p282_p0  ;;  %p2884_p6 = por %p289_p4, %p288_p3 }
   0xe   : > { %3359 = sst [smem:[#allocation6_spill]] %s2878_s26  ;;  %p352_p8 = scmp.lt.s32.totalorder %s2777_s20, 3 }
  0x10   : > { %p353_p9 = pnand %p2152_p7, %p352_p8 }
  0x11   : > { %s3362_s2 = sld [smem:[#allocation8_spill]] (!%p353_p9)  ;;  %s2154_s12 = sshll.u32 (!%p353_p9), %s2863_s21, 5 }
  0x12   : > { %356 = sbr.rel (%p353_p9) target bundleno = 933 (0x3a5), region = 64  ;;  %p398_p10 = scmp.lt.s32.totalorder (!%p353_p9), %s2154_s12, 63 }
  0x13   : > { %s3363_s0 = sld [smem:[#allocation7_spill]] (!%p353_p9)  ;;  %s394_s14 = sand.u32 (!%p353_p9), 1, %s2769_s18  }
  0x14   : > { %s2153_s16 = sshll.u32 (!%p353_p9), %s394_s14, 8 }
  0x15   : > { %s3227_s24 = scalar_lea.vmem (!%p353_p9), [#allocation2], %s2153_s16 }
  0x16   : > { %s2075_s30 = sshll.u32 (!%p353_p9), %s3227_s24, 4  ;;  %s3296_s30 = int_to_ptr.vmem [resolvable:$true] %s2075_s30 }
  0x17   : > { %v2649_v0 = vld [vmem:[%s3362_s2 + $0x18] sm:$0xff]   ;;  %v2650_v1 = vld [vmem:[%s3362_s2 + $0x10] sm:$0xff]   ;;  %s3371_s12 = smov (!%p398_p10, %s2154_s12), 63  ;;  %v2651_v2 = vld [vmem:[%s3362_s2 + $0x8] sm:$0xff]   ;;  %vm594_vm0 = vcmask 523264  }
  0x18   : > { %2368 = vmatprep.subr.bf16.mxu0 %v2649_v0  ;;  %2600 = vmatprep.subr.bf16.mxu1 %v2649_v0  ;;  %s3354_s22 = sshll.u32 %s3371_s12, 2  ;;  %v2652_v4 = vld [vmem:[%s3362_s2] sm:$0xff]   ;;  %v2669_v5 = vld [vmem:[%s3347_s5 + $0x38] sm:$0xff]   ;;  %v2670_v10 = vld [vmem:[%s3347_s5 + $0x30] sm:$0xff]   ;;  %s3364_s25 = sshll.u32 %s3371_s12, 2 }
  0x19   : > { %2369 = vmatpush3.bf16.msra.mxu0 %v2649_v0  ;;  %2604 = vmatpush3.bf16.msra.mxu1 %v2649_v0  ;;  %s2908_s29 = scalar_lea.vmem %s3363_s0, %s3354_s22  ;;  %v2671_v6 = vld [vmem:[%s3346_s4 + $0x38] sm:$0xff]   ;;  %v2672_v17 = vld [vmem:[%s3347_s5 + $0x28] sm:$0xff]   ;;  %v2673_v18 = vld [vmem:[%s3346_s4 + $0x30] sm:$0xff]   ;;  %s2972_s2 = scalar_lea.vmem %s3343_s1, %s3364_s25 }
  0x1a   : > { %2370 = vmatprep.subr.bf16.mxu0 %v2650_v1  ;;  %2601 = vmatprep.subr.bf16.mxu1 %v2650_v1  ;;  %v2653_v3 = vld [vmem:[%s2908_s29] sm:$0xff]   ;;  %v2654_v7 = vld [vmem:[%s2908_s29 + $0x8] sm:$0xff]   ;;  %v2655_v8 = vld [vmem:[%s2908_s29 + $0x10] sm:$0xff]   ;;  %s2251_s25 = sshll.u32 %s2863_s21, 12  ;;  %s3302_s21 = scalar_lea.sflag [#allocation3], %s394_s14 }
  0x1b   : > { %2376 = vmatprep.mubr.msk.bf16.mxu0 %vm594_vm0, %v2653_v3  ;;  %v2661_v9 = vld [vmem:[%s2908_s29 + $0x40] sm:$0xff]   ;;  %v2662_v11 = vld [vmem:[%s2908_s29 + $0x48] sm:$0xff]   ;;  %v2663_v12 = vld [vmem:[%s2908_s29 + $0x50] sm:$0xff]   ;;  %s3294_s26 = scalar_lea.hbm %s3353_s11, %s2251_s25  ;;  %s2779_s12 = smov [#allocation2]  }
  0x1c   : > { %2392 = vmatprep.mubr.msk.bf16.mxu1 %vm594_vm0, %v2661_v9  ;;  %v2656_v13 = vld [vmem:[%s2908_s29 + $0x18] sm:$0xff]   ;;  %v2657_v14 = vld [vmem:[%s2908_s29 + $0x20] sm:$0xff]   ;;  %v2675_v20 = vld [vmem:[%s3346_s4 + $0x28] sm:$0xff]  }
  0x1d   : > { %2371 = vmatpush3.bf16.msra.mxu0 %v2650_v1  ;;  %2605 = vmatpush3.bf16.msra.mxu1 %v2650_v1  ;;  %v2664_v15 = vld [vmem:[%s2908_s29 + $0x58] sm:$0xff]   ;;  %v2665_v16 = vld [vmem:[%s2908_s29 + $0x60] sm:$0xff]   ;;  %v2658_v21 = vld [vmem:[%s2908_s29 + $0x28] sm:$0xff]  }
  0x1e   : > { %2372 = vmatprep.subr.bf16.mxu0 %v2651_v2  ;;  %2602 = vmatprep.subr.bf16.mxu1 %v2651_v2  ;;  %v2674_v19 = vld [vmem:[%s3347_s5 + $0x20] sm:$0xff]   ;;  %v2666_v22 = vld [vmem:[%s2908_s29 + $0x68] sm:$0xff]   ;;  %v2659_v23 = vld [vmem:[%s2908_s29 + $0x30] sm:$0xff]  }
  0x1f   : > { %v2667_v24 = vld [vmem:[%s2908_s29 + $0x70] sm:$0xff]   ;;  %v2676_v25 = vld [vmem:[%s3347_s5 + $0x18] sm:$0xff]   ;;  %v2677_v26 = vld [vmem:[%s3346_s4 + $0x20] sm:$0xff]  }
  0x20   : > { %v2678_v27 = vld [vmem:[%s3347_s5 + $0x10] sm:$0xff]   ;;  %v2679_v28 = vld [vmem:[%s3346_s4 + $0x18] sm:$0xff]   ;;  %v2680_v31 = vld [vmem:[%s3347_s5 + $0x8] sm:$0xff]  }
  0x21   : > { %2373 = vmatpush3.bf16.msra.mxu0 %v2651_v2  ;;  %2606 = vmatpush3.bf16.msra.mxu1 %v2651_v2  ;;  %v2660_v29 = vld [vmem:[%s2908_s29 + $0x38] sm:$0xff]   ;;  %v2681_v32 = vld [vmem:[%s3346_s4 + $0x10] sm:$0xff]   ;;  %v2682_v33 = vld [vmem:[%s3347_s5] sm:$0xff]  }
  0x22   : > { %2374 = vmatprep.subr.bf16.mxu0 %v2652_v4  ;;  %2603 = vmatprep.subr.bf16.mxu1 %v2652_v4  ;;  %v2668_v30 = vld [vmem:[%s2908_s29 + $0x78] sm:$0xff]   ;;  %v2683_v34 = vld [vmem:[%s3346_s4 + $0x8] sm:$0xff]   ;;  %v2684_v35 = vld [vmem:[%s2972_s2] sm:$0xff]   ;;  %s2721_s29 = sshll.u32 %s2779_s12, 4  ;;  %s2722_s29 = int_to_ptr.vmem [resolvable:$false] %s2721_s29 }
  0x23   : > { %v2685_v36 = vld [vmem:[%s2972_s2 + $0x8] sm:$0xff]   ;;  %v2686_v37 = vld [vmem:[%s3346_s4] sm:$0xff]   ;;  %v2687_v38 = vld [vmem:[%s2972_s2 + $0x10] sm:$0xff]   ;;  %s2723_s13 = scalar_lea.vmem %s2722_s29, 8192  ;;  %p2724_p0 = scmp.lt.s32.totalorder %s3296_s30, %s2722_s29 }
  0x24   : > { %v2688_v39 = vld [vmem:[%s2972_s2 + $0x18] sm:$0xff]   ;;  %v2689_v40 = vld [vmem:[%s2972_s2 + $0x20] sm:$0xff]   ;;  %v2690_v41 = vld [vmem:[%s2972_s2 + $0x28] sm:$0xff]  }
  0x25   : > { %2375 = vmatpush3.bf16.msra.mxu0 %v2652_v4  ;;  %2607 = vmatpush3.bf16.msra.mxu1 %v2652_v4  ;;  %v2691_v42 = vld [vmem:[%s2972_s2 + $0x30] sm:$0xff]   ;;  %v2692_v43 = vld [vmem:[%s2972_s2 + $0x38] sm:$0xff]   ;;  %v2693_v44 = vld [vmem:[%s2972_s2 + $0x40] sm:$0xff]  }
  0x26   : > { %2408 = vmatprep.subr.bf16.mxu1 %v2669_v5  ;;  %2456 = vmatprep.subr.bf16.mxu0 %v2671_v6  ;;  %v2694_v45 = vld [vmem:[%s2972_s2 + $0x48] sm:$0xff]   ;;  %v2695_v46 = vld [vmem:[%s2972_s2 + $0x50] sm:$0xff]   ;;  %v2696_v47 = vld [vmem:[%s2972_s2 + $0x58] sm:$0xff]  }
  0x27   : > { %v2697_v48 = vld [vmem:[%s2972_s2 + $0x60] sm:$0xff]   ;;  %v2698_v49 = vld [vmem:[%s2972_s2 + $0x68] sm:$0xff]   ;;  %v2699_v50 = vld [vmem:[%s2972_s2 + $0x70] sm:$0xff]  }
  0x28   : > { %2377 = vmatmul.mubr.msk.bf16.vlgmr.msra.gmra.mxu0 %vm594_vm0, %v2654_v7  ;;  %2393 = vmatmul.mubr.msk.bf16.vlgmr.msra.gmra.mxu1 %vm594_vm0, %v2662_v11  ;;  %v2700_v51 = vld [vmem:[%s2972_s2 + $0x78] sm:$0xff]   ;;  %v2702_v53 = vld [vmem:[%s3349_s7 + $0x30] sm:$0xff]   ;;  %v2703_v54 = vld [vmem:[%s3349_s7 + $0x28] sm:$0xff]   ;;  %s2717_s2 = scalar_lea.vmem %s3296_s30, 4096 }
  0x29   : > { %2380 = vmatprep.mubr.msk.bf16.mxu0 %vm594_vm0, %v2655_v8  ;;  %2396 = vmatprep.mubr.msk.bf16.mxu1 %vm594_vm0, %v2663_v12  ;;  %v2701_v52 = vld [vmem:[%s3349_s7 + $0x38] sm:$0xff]   ;;  %v2704_v55 = vld [vmem:[%s3349_s7 + $0x20] sm:$0xff]   ;;  %v2706_v57 = vld [vmem:[%s3349_s7 + $0x10] sm:$0xff]   ;;  %p2718_p11 = scmp.ne.s32.totalorder %s3296_s30, %s2717_s2  ;;  %p2725_p1 = scmp.lt.s32.totalorder %s2723_s13, %s2717_s2 }
  0x2a   : > { %2409 = vmatpush3.bf16.msra.mxu1 %v2669_v5  ;;  %2457 = vmatpush3.bf16.msra.mxu0 %v2671_v6  ;;  %v2705_v56 = vld [vmem:[%s3349_s7 + $0x18] sm:$0xff]   ;;  %v2707_v58 = vld [vmem:[%s3349_s7 + $0x8] sm:$0xff]   ;;  %v3042_v63 = vld [vmem:[%s3345_s3] ss:$0 sm:$0xff] }
  0x2b   : > { %2410 = vmatprep.subr.bf16.mxu1 %v2670_v10  ;;  %2458 = vmatprep.subr.bf16.mxu0 %v2673_v18  ;;  %p2719_p12 = pnand %p2718_p11, %p2880_p5  ;;  %p2726_p2 = por %p2725_p1, %p2724_p0 }
  0x2d   : > { %p2720_p13 = pneg %p2719_p12 }
  0x2e   : > { %2411 = vmatpush3.bf16.msra.mxu1 %v2670_v10  ;;  %2459 = vmatpush3.bf16.msra.mxu0 %v2673_v18 }
  0x2f   : > { %2412 = vmatprep.subr.bf16.mxu1 %v2672_v17  ;;  %2460 = vmatprep.subr.bf16.mxu0 %v2675_v20  ;;  %p2727_p3 = pnand %p2726_p2, %p2720_p13 }
  0x30   : > { %2381 = vmatmul.mubr.msk.bf16.gmra.mxu0 %vm594_vm0, %v2656_v13  ;;  %2397 = vmatmul.mubr.msk.bf16.gmra.mxu1 %vm594_vm0, %v2664_v15 }
  0x31   : > { %2384 = vmatprep.mubr.msk.bf16.mxu0 %vm594_vm0, %v2657_v14  ;;  %2400 = vmatprep.mubr.msk.bf16.mxu1 %vm594_vm0, %v2665_v16 }
  0x32   : > { %2413 = vmatpush3.bf16.msra.mxu1 %v2672_v17  ;;  %2461 = vmatpush3.bf16.msra.mxu0 %v2675_v20 }
  0x33   : > { %2414 = vmatprep.subr.bf16.mxu1 %v2674_v19  ;;  %2462 = vmatprep.subr.bf16.mxu0 %v2677_v26 }
  0x36   : > { %2415 = vmatpush3.bf16.msra.mxu1 %v2674_v19  ;;  %2463 = vmatpush3.bf16.msra.mxu0 %v2677_v26 }
  0x37   : > { %2416 = vmatprep.subr.bf16.mxu1 %v2676_v25  ;;  %2464 = vmatprep.subr.bf16.mxu0 %v2679_v28 }
  0x38   : > { %2385 = vmatmul.mubr.msk.bf16.gmra.mxu0 %vm594_vm0, %v2658_v21  ;;  %2401 = vmatmul.mubr.msk.bf16.gmra.mxu1 %vm594_vm0, %v2666_v22 }
  0x39   : > { %2388 = vmatprep.mubr.msk.bf16.mxu0 %vm594_vm0, %v2659_v23  ;;  %2404 = vmatprep.mubr.msk.bf16.mxu1 %vm594_vm0, %v2667_v24 }
  0x3a   : > { %2417 = vmatpush3.bf16.msra.mxu1 %v2676_v25  ;;  %2465 = vmatpush3.bf16.msra.mxu0 %v2679_v28 }
  0x3b   : > { %2418 = vmatprep.subr.bf16.mxu1 %v2678_v27  ;;  %2466 = vmatprep.subr.bf16.mxu0 %v2681_v32 }
  0x3e   : > { %2419 = vmatpush3.bf16.msra.mxu1 %v2678_v27  ;;  %2467 = vmatpush3.bf16.msra.mxu0 %v2681_v32 }
  0x3f   : > { %2420 = vmatprep.subr.bf16.mxu1 %v2680_v31  ;;  %2468 = vmatprep.subr.bf16.mxu0 %v2683_v34 }
  0x40   : > { %2389 = vmatmul.mubr.msk.bf16.gmra.mxu0 %vm594_vm0, %v2660_v29  ;;  %2405 = vmatmul.mubr.msk.bf16.gmra.mxu1 %vm594_vm0, %v2668_v30 }
  0x41   : > { %2424 = vmatprep.mubr.bf16.mxu1 %v2684_v35 }
  0x42   : > { %2421 = vmatpush3.bf16.msra.mxu1 %v2680_v31  ;;  %2469 = vmatpush3.bf16.msra.mxu0 %v2683_v34 }
  0x43   : > { %2422 = vmatprep.subr.bf16.mxu1 %v2682_v33  ;;  %2470 = vmatprep.subr.bf16.mxu0 %v2686_v37 }
  0x46   : > { %2423 = vmatpush3.bf16.msra.mxu1 %v2682_v33  ;;  %2471 = vmatpush3.bf16.msra.mxu0 %v2686_v37 }
  0x47   : > { %2504 = vmatprep.subr.bf16.mxu1 %v2701_v52 }
  0x49   : > { %2425 = vmatmul.mubr.bf16.vlgmr.msra.gmra.mxu1 %v2685_v36 }
  0x4a   : > { %2428 = vmatprep.mubr.bf16.mxu1 %v2687_v38  ;;  %2505 = vmatpush3.bf16.msra.mxu1 %v2701_v52 }
  0x4b   : > { %2506 = vmatprep.subr.bf16.mxu1 %v2702_v53 }
  0x4e   : > { %2507 = vmatpush3.bf16.msra.mxu1 %v2702_v53 }
  0x4f   : > { %2508 = vmatprep.subr.bf16.mxu1 %v2703_v54 }
  0x51   : > { %2429 = vmatmul.mubr.bf16.gmra.mxu1 %v2688_v39 }
  0x52   : > { %2432 = vmatprep.mubr.bf16.mxu1 %v2689_v40  ;;  %2509 = vmatpush3.bf16.msra.mxu1 %v2703_v54 }
  0x53   : > { %2510 = vmatprep.subr.bf16.mxu1 %v2704_v55 }
  0x56   : > { %2511 = vmatpush3.bf16.msra.mxu1 %v2704_v55 }
  0x57   : > { %2512 = vmatprep.subr.bf16.mxu1 %v2705_v56 }
  0x59   : > { %2433 = vmatmul.mubr.bf16.gmra.mxu1 %v2690_v41 }
  0x5a   : > { %2436 = vmatprep.mubr.bf16.mxu1 %v2691_v42  ;;  %2513 = vmatpush3.bf16.msra.mxu1 %v2705_v56 }
  0x5b   : > { %2514 = vmatprep.subr.bf16.mxu1 %v2706_v57 }
  0x5e   : > { %2515 = vmatpush3.bf16.msra.mxu1 %v2706_v57 }
  0x5f   : > { %2516 = vmatprep.subr.bf16.mxu1 %v2707_v58 }
  0x61   : > { %2437 = vmatmul.mubr.bf16.gmra.mxu1 %v2692_v43 }
  0x62   : > { %2440 = vmatprep.mubr.bf16.mxu1 %v2693_v44  ;;  %2517 = vmatpush3.bf16.msra.mxu1 %v2707_v58 }
  0x69   : > { %2441 = vmatmul.mubr.bf16.gmra.mxu1 %v2694_v45 }
  0x6a   : > { %2444 = vmatprep.mubr.bf16.mxu1 %v2695_v46 }
  0x71   : > { %2445 = vmatmul.mubr.bf16.gmra.mxu1 %v2696_v47 }
  0x72   : > { %2448 = vmatprep.mubr.bf16.mxu1 %v2697_v48 }
  0x79   : > { %2449 = vmatmul.mubr.bf16.gmra.mxu1 %v2698_v49 }
  0x7a   : > { %2452 = vmatprep.mubr.bf16.mxu1 %v2699_v50 }
  0x81   : > { %2453 = vmatmul.mubr.bf16.gmra.mxu1 %v2700_v51 }
  0xe8   : > { %v2378_v59 = vpop.f32.mrf.mxu0  ;;  %v3037_v60 = vpop.f32.mrf.mxu1 }
  0xe9   : > { %v686_v4 = vadd.f32 %v2378_v59, %v3042_v63 }
  0xea   : > { %v677_v61 = vpop.f32.mrf.mxu0  ;;  %v741_v62 = vpop.f32.mrf.mxu1 }
  0xeb   : > { %v678_v2 = vadd.f32 %v3042_v63, %v677_v61  ;;  %v806_v13 = vmax.f32 %v686_v4, 0.0  ;;  %v742_v49 = vadd.f32 %v3042_v63, %v741_v62 }
  0xec   : > { %v2379_v0 = vpop.f32.mrf.mxu0  ;;  %v3044_v1 = vpop.f32.mrf.mxu1 }
  0xed   : > { %v689_v3 = vadd.f32 %v2379_v0, %v3042_v63  ;;  %v804_v11 = vmax.f32 %v678_v2, 0.0  ;;  %v820_v58 = vmax.f32 %v742_v49, 0.0 }
  0xee   : > { %v680_v5 = vpop.f32.mrf.mxu0  ;;  %v744_v6 = vpop.f32.mrf.mxu1 }
  0xef   : > { %v681_v7 = vadd.f32 %v3042_v63, %v680_v5  ;;  %v807_v8 = vmax.f32 %v689_v3, 0.0  ;;  %v745_v50 = vadd.f32 %v3042_v63, %v744_v6 }
  0xf0   : > { %v2382_v9 = vpop.f32.mrf.mxu0  ;;  %v3050_v10 = vpop.f32.mrf.mxu1 }
  0xf1   : > { %v805_v12 = vmax.f32 %v681_v7, 0.0  ;;  %v837_v17 = vpack.c.bf16 %v807_v8, %v806_v13  ;;  %v702_v22 = vadd.f32 %v2382_v9, %v3042_v63  ;;  %v821_v61 = vmax.f32 %v745_v50, 0.0  ;;  %v2711_v50 = vld [vmem:[%s3351_s9 + $0x28] sm:$0xff]  }
  0xf2   : > { %v693_v14 = vpop.f32.mrf.mxu0  ;;  %v757_v15 = vpop.f32.mrf.mxu1  ;;  %v750_v9 = vadd.f32 %v3037_v60, %v3042_v63  ;;  %v766_v60 = vadd.f32 %v3050_v10, %v3042_v63 }
  0xf3   : > { %v836_v16 = vpack.c.bf16 %v805_v12, %v804_v11  ;;  %v694_v20 = vadd.f32 %v3042_v63, %v693_v14  ;;  %v810_v30 = vmax.f32 %v702_v22, 0.0  ;;  %v844_v6 = vpack.c.bf16 %v821_v61, %v820_v58  ;;  %v2715_v58 = vld [vmem:[%s3351_s9 + $0x8] sm:$0xff]  }
  0xf4   : > { %v2383_v18 = vpop.f32.mrf.mxu0  ;;  %v3052_v19 = vpop.f32.mrf.mxu1  ;;  %v758_v7 = vadd.f32 %v3042_v63, %v757_v15  ;;  %v753_v12 = vadd.f32 %v3044_v1, %v3042_v63 }
  0xf5   : > { %v705_v21 = vadd.f32 %v2383_v18, %v3042_v63  ;;  %2472 = vmatprep.mubr.bf16.mxu0 %v836_v16  ;;  %v808_v28 = vmax.f32 %v694_v20, 0.0  ;;  %v769_v1 = vadd.f32 %v3052_v19, %v3042_v63 }
  0xf6   : > { %v696_v23 = vpop.f32.mrf.mxu0  ;;  %2473 = vmatmul.mubr.bf16.vlgmr.msra.gmra.mxu0 %v837_v17  ;;  %v760_v27 = vpop.f32.mrf.mxu1  ;;  %v824_v14 = vmax.f32 %v758_v7, 0.0  ;;  %v822_v17 = vmax.f32 %v750_v9, 0.0  ;;  %v823_v18 = vmax.f32 %v753_v12, 0.0 }
  0xf7   : > { %v697_v24 = vadd.f32 %v3042_v63, %v696_v23  ;;  %v811_v25 = vmax.f32 %v705_v21, 0.0  ;;  %v761_v8 = vadd.f32 %v3042_v63, %v760_v27  ;;  %v826_v27 = vmax.f32 %v766_v60, 0.0 }
  0xf8   : > { %v2386_v26 = vpop.f32.mrf.mxu0  ;;  %v3058_v35 = vpop.f32.mrf.mxu1  ;;  %v845_v23 = vpack.c.bf16 %v823_v18, %v822_v17 }
  0xf9   : > { %v809_v29 = vmax.f32 %v697_v24, 0.0  ;;  %v839_v33 = vpack.c.bf16 %v811_v25, %v810_v30  ;;  %v718_v38 = vadd.f32 %v2386_v26, %v3042_v63  ;;  %v825_v16 = vmax.f32 %v761_v8, 0.0 }
  0xfa   : > { %v709_v31 = vpop.f32.mrf.mxu0  ;;  %v773_v43 = vpop.f32.mrf.mxu1  ;;  %v782_v10 = vadd.f32 %v3058_v35, %v3042_v63  ;;  %v2708_v35 = vld [vmem:[%s3349_s7] sm:$0xff]  }
  0xfb   : > { %v838_v32 = vpack.c.bf16 %v809_v29, %v808_v28  ;;  %v710_v36 = vadd.f32 %v3042_v63, %v709_v31  ;;  %v814_v46 = vmax.f32 %v718_v38, 0.0  ;;  %v846_v21 = vpack.c.bf16 %v825_v16, %v824_v14  ;;  %2518 = vmatprep.subr.bf16.mxu1 %v2708_v35  ;;  %v3126_v14 = vld [vmem:[%s3348_s6] ss:$0 sm:$0xff] }
  0xfc   : > { %v2387_v34 = vpop.f32.mrf.mxu0  ;;  %v2403_v53 = vpop.f32.mrf.mxu1  ;;  %v774_v15 = vadd.f32 %v3042_v63, %v773_v43  ;;  %v827_v28 = vmax.f32 %v769_v1, 0.0  ;;  %2519 = vmatpush3.bf16.msra.mxu1 %v2708_v35 }
  0xfd   : > { %v721_v37 = vadd.f32 %v2387_v34, %v3042_v63  ;;  %2476 = vmatprep.mubr.bf16.mxu0 %v838_v32  ;;  %v812_v44 = vmax.f32 %v710_v36, 0.0  ;;  %v785_v34 = vadd.f32 %v2403_v53, %v3042_v63 }
  0xfe   : > { %v712_v39 = vpop.f32.mrf.mxu0  ;;  %2477 = vmatmul.mubr.bf16.gmra.mxu0 %v839_v33  ;;  %v776_v62 = vpop.f32.mrf.mxu1  ;;  %v828_v25 = vmax.f32 %v774_v15, 0.0  ;;  %v847_v33 = vpack.c.bf16 %v827_v28, %v826_v27 }
  0xff   : > { %v713_v40 = vadd.f32 %v3042_v63, %v712_v39  ;;  %v815_v41 = vmax.f32 %v721_v37, 0.0  ;;  %v777_v22 = vadd.f32 %v3042_v63, %v776_v62  ;;  %v830_v37 = vmax.f32 %v782_v10, 0.0 }
 0x100   : > { %v2390_v42 = vpop.f32.mrf.mxu0  ;;  %v2406_v13 = vpop.f32.mrf.mxu1  ;;  %v831_v38 = vmax.f32 %v785_v34, 0.0 }
 0x101   : > { %v813_v45 = vmax.f32 %v713_v40, 0.0  ;;  %v841_v51 = vpack.c.bf16 %v815_v41, %v814_v46  ;;  %v734_v56 = vadd.f32 %v2390_v42, %v3042_v63  ;;  %v829_v26 = vmax.f32 %v777_v22, 0.0 }
 0x102   : > { %v725_v47 = vpop.f32.mrf.mxu0  ;;  %v789_v20 = vpop.f32.mrf.mxu1  ;;  %v849_v40 = vpack.c.bf16 %v831_v38, %v830_v37  ;;  %v798_v41 = vadd.f32 %v2406_v13, %v3042_v63 }
 0x103   : > { %v840_v48 = vpack.c.bf16 %v813_v45, %v812_v44  ;;  %v726_v54 = vadd.f32 %v3042_v63, %v725_v47  ;;  %v818_v4 = vmax.f32 %v734_v56, 0.0  ;;  %v848_v30 = vpack.c.bf16 %v829_v26, %v828_v25  ;;  %v2714_v56 = vld [vmem:[%s3351_s9 + $0x10] sm:$0xff]  }
 0x104   : > { %v2391_v52 = vpop.f32.mrf.mxu0  ;;  %v2407_v24 = vpop.f32.mrf.mxu1  ;;  %v790_v31 = vadd.f32 %v3042_v63, %v789_v20  ;;  %v834_v43 = vmax.f32 %v798_v41, 0.0 }
 0x105   : > { %v737_v55 = vadd.f32 %v2391_v52, %v3042_v63  ;;  %2480 = vmatprep.mubr.bf16.mxu0 %v840_v48  ;;  %v816_v2 = vmax.f32 %v726_v54, 0.0  ;;  %v801_v42 = vadd.f32 %v2407_v24, %v3042_v63  ;;  %v2709_v48 = vld [vmem:[%s3351_s9 + $0x38] sm:$0xff]   ;;  %v2712_v52 = vld [vmem:[%s3351_s9 + $0x20] sm:$0xff]  }
 0x106   : > { %v728_v57 = vpop.f32.mrf.mxu0  ;;  %2481 = vmatmul.mubr.bf16.gmra.mxu0 %v841_v51  ;;  %v792_v29 = vpop.f32.mrf.mxu1  ;;  %v832_v19 = vmax.f32 %v790_v31, 0.0  ;;  %2552 = vmatprep.subr.bf16.mxu0 %v2709_v48  ;;  %v2713_v54 = vld [vmem:[%s3351_s9 + $0x18] sm:$0xff]  }
 0x107   : > { %v729_v59 = vadd.f32 %v3042_v63, %v728_v57  ;;  %v819_v0 = vmax.f32 %v737_v55, 0.0  ;;  %v793_v32 = vadd.f32 %v3042_v63, %v792_v29  ;;  %v835_v44 = vmax.f32 %v801_v42, 0.0  ;;  %v2710_v63 = vld [vmem:[%s3351_s9 + $0x30] sm:$0xff]   ;;  %2553 = vmatpush3.bf16.msra.mxu0 %v2709_v48 }
 0x108   : > { %2554 = vmatprep.subr.bf16.mxu0 %v2710_v63 }
 0x109   : > { %v817_v3 = vmax.f32 %v729_v59, 0.0  ;;  %v843_v11 = vpack.c.bf16 %v819_v0, %v818_v4  ;;  %v833_v36 = vmax.f32 %v793_v32, 0.0  ;;  %v851_v45 = vpack.c.bf16 %v835_v44, %v834_v43  ;;  %v2426_v46 = vpop.f32.mrf.mxu1 }
 0x10b   : > { %v842_v5 = vpack.c.bf16 %v817_v3, %v816_v2  ;;  %v850_v39 = vpack.c.bf16 %v833_v36, %v832_v19  ;;  %v1062_v47 = vpop.f32.mrf.mxu1  ;;  %2555 = vmatpush3.bf16.msra.mxu0 %v2710_v63 }
 0x10c   : > { %2556 = vmatprep.subr.bf16.mxu0 %v2711_v50 }
 0x10d   : > { %2484 = vmatprep.mubr.bf16.mxu0 %v842_v5  ;;  %v2427_v49 = vpop.f32.mrf.mxu1 }
 0x10e   : > { %2485 = vmatmul.mubr.bf16.gmra.mxu0 %v843_v11 }
 0x10f   : > { %2488 = vmatprep.mubr.bf16.mxu0 %v844_v6  ;;  %v1065_v51 = vpop.f32.mrf.mxu1  ;;  %2557 = vmatpush3.bf16.msra.mxu0 %v2711_v50 }
 0x110   : > { %2558 = vmatprep.subr.bf16.mxu0 %v2712_v52 }
 0x111   : > { %v2430_v53 = vpop.f32.mrf.mxu1 }
 0x113   : > { %v1078_v55 = vpop.f32.mrf.mxu1  ;;  %2559 = vmatpush3.bf16.msra.mxu0 %v2712_v52 }
 0x114   : > { %2560 = vmatprep.subr.bf16.mxu0 %v2713_v54 }
 0x115   : > { %v2431_v57 = vpop.f32.mrf.mxu1 }
 0x116   : > { %2489 = vmatmul.mubr.bf16.gmra.mxu0 %v845_v23 }
 0x117   : > { %2492 = vmatprep.mubr.bf16.mxu0 %v846_v21  ;;  %2561 = vmatpush3.bf16.msra.mxu0 %v2713_v54  ;;  %v1081_v59 = vpop.f32.mrf.mxu1 }
 0x118   : > { %2562 = vmatprep.subr.bf16.mxu0 %v2714_v56 }
 0x119   : > { %v2434_v61 = vpop.f32.mrf.mxu1 }
 0x11b   : > { %2563 = vmatpush3.bf16.msra.mxu0 %v2714_v56  ;;  %v1094_v0 = vpop.f32.mrf.mxu1 }
 0x11c   : > { %2564 = vmatprep.subr.bf16.mxu0 %v2715_v58 }
 0x11d   : > { %v2435_v62 = vpop.f32.mrf.mxu1 }
 0x11e   : > { %2493 = vmatmul.mubr.bf16.gmra.mxu0 %v847_v33 }
 0x11f   : > { %2496 = vmatprep.mubr.bf16.mxu0 %v848_v30  ;;  %2565 = vmatpush3.bf16.msra.mxu0 %v2715_v58  ;;  %v1097_v2 = vpop.f32.mrf.mxu1 }
 0x121   : > { %v3113_v3 = vpop.f32.mrf.mxu1 }
 0x123   : > { %v3115_v4 = vpop.f32.mrf.mxu1 }
 0x125   : > { %v3117_v5 = vpop.f32.mrf.mxu1 }
 0x126   : > { %2497 = vmatmul.mubr.bf16.gmra.mxu0 %v849_v40 }
 0x127   : > { %2500 = vmatprep.mubr.bf16.mxu0 %v850_v39  ;;  %v3119_v6 = vpop.f32.mrf.mxu1 }
 0x129   : > { %v3121_v9 = vpop.f32.mrf.mxu1 }
 0x12b   : > { %v3128_v18 = vpop.f32.mrf.mxu1 }
 0x12d   : > { %v3134_v25 = vpop.f32.mrf.mxu1 }
 0x12e   : > { %2501 = vmatmul.mubr.bf16.gmra.mxu0 %v851_v45 }
 0x12f   : > { %v3136_v19 = vpop.f32.mrf.mxu1 }
 0x131   : > { %v3142_v44 = vpop.f32.mrf.mxu1 }
 0x1b6   : > { %v2474_v7 = vpop.f32.mrf.mxu0 }
 0x1b7   : > { %v1280_v12 = vadd.f32 %v2474_v7, %v2426_v46 }
 0x1b8   : > { %v1271_v8 = vpop.f32.mrf.mxu0 }
 0x1b9   : > { %v1272_v11 = vadd.f32 %v1271_v8, %v1062_v47  ;;  %v1407_v22 = vadd.f32 %v3126_v14, %v1280_v12 }
 0x1ba   : > { %v2475_v13 = vpop.f32.mrf.mxu0 }
 0x1bb   : > { %v1283_v16 = vadd.f32 %v2475_v13, %v2427_v49  ;;  %v1405_v20 = vadd.f32 %v3126_v14, %v1272_v11  ;;  %v1439_v29 = vmax.f32 %v1407_v22, 0.0 }
 0x1bc   : > { %v1274_v17 = vpop.f32.mrf.mxu0 }
 0x1bd   : > { %v1408_v21 = vadd.f32 %v3126_v14, %v1283_v16  ;;  %v1275_v15 = vadd.f32 %v1274_v17, %v1065_v51  ;;  %v1437_v26 = vmax.f32 %v1405_v20, 0.0 }
 0x1be   : > { %v2478_v23 = vpop.f32.mrf.mxu0 }
 0x1bf   : > { %v1406_v60 = vadd.f32 %v3126_v14, %v1275_v15  ;;  %v1440_v1 = vmax.f32 %v1408_v21, 0.0  ;;  %v1296_v30 = vadd.f32 %v2478_v23, %v2430_v53  ;;  %v1142_v53 = vpop.f32.mrf.mxu1 }
 0x1c0   : > { %v1287_v24 = vpop.f32.mrf.mxu0 }
 0x1c1   : > { %v1438_v27 = vmax.f32 %v1406_v60, 0.0  ;;  %v1288_v28 = vadd.f32 %v1287_v24, %v1078_v55  ;;  %v1470_v10 = vpack.c.bf16 %v1440_v1, %v1439_v29  ;;  %v1411_v39 = vadd.f32 %v3126_v14, %v1296_v30  ;;  %v2447_v7 = vpop.f32.mrf.mxu1 }
 0x1c2   : > { %v2479_v31 = vpop.f32.mrf.mxu0 }
 0x1c3   : > { %v1299_v32 = vadd.f32 %v2479_v31, %v2431_v57  ;;  %v1469_v33 = vpack.c.bf16 %v1438_v27, %v1437_v26  ;;  %v1409_v36 = vadd.f32 %v3126_v14, %v1288_v28  ;;  %v1443_v47 = vmax.f32 %v1411_v39, 0.0  ;;  %v1145_v15 = vpop.f32.mrf.mxu1 }
 0x1c4   : > { %v1290_v34 = vpop.f32.mrf.mxu0 }
 0x1c5   : > { %v1412_v37 = vadd.f32 %v3126_v14, %v1299_v32  ;;  %v1291_v38 = vadd.f32 %v1290_v34, %v1081_v59  ;;  %2520 = vmatprep.mubr.bf16.mxu1 %v1469_v33  ;;  %v1441_v45 = vmax.f32 %v1409_v36, 0.0 }
 0x1c6   : > { %v2482_v40 = vpop.f32.mrf.mxu0  ;;  %2521 = vmatmul.mubr.bf16.vlgmr.msra.gmra.mxu1 %v1470_v10 }
 0x1c7   : > { %v1410_v41 = vadd.f32 %v3126_v14, %v1291_v38  ;;  %v1444_v42 = vmax.f32 %v1412_v37, 0.0  ;;  %v1312_v48 = vadd.f32 %v2482_v40, %v2434_v61 }
 0x1c8   : > { %v1303_v43 = vpop.f32.mrf.mxu0 }
 0x1c9   : > { %v1442_v35 = vmax.f32 %v1410_v41, 0.0  ;;  %v1304_v46 = vadd.f32 %v1303_v43, %v1094_v0  ;;  %v1472_v52 = vpack.c.bf16 %v1444_v42, %v1443_v47  ;;  %v1415_v57 = vadd.f32 %v3126_v14, %v1312_v48 }
 0x1ca   : > { %v2483_v63 = vpop.f32.mrf.mxu0 }
 0x1cb   : > { %v1315_v49 = vadd.f32 %v2483_v63, %v2435_v62  ;;  %v1471_v50 = vpack.c.bf16 %v1442_v35, %v1441_v45  ;;  %v1413_v54 = vadd.f32 %v3126_v14, %v1304_v46  ;;  %v1447_v12 = vmax.f32 %v1415_v57, 0.0 }
 0x1cc   : > { %v1306_v51 = vpop.f32.mrf.mxu0 }
 0x1cd   : > { %v1416_v55 = vadd.f32 %v3126_v14, %v1315_v49  ;;  %v1307_v56 = vadd.f32 %v1306_v51, %v1097_v2  ;;  %2524 = vmatprep.mubr.bf16.mxu1 %v1471_v50  ;;  %v1445_v62 = vmax.f32 %v1413_v54, 0.0 }
 0x1ce   : > { %v2486_v58 = vpop.f32.mrf.mxu0  ;;  %2525 = vmatmul.mubr.bf16.gmra.mxu1 %v1472_v52 }
 0x1cf   : > { %v1414_v59 = vadd.f32 %v3126_v14, %v1307_v56  ;;  %v1448_v0 = vmax.f32 %v1416_v55, 0.0  ;;  %v1328_v13 = vadd.f32 %v2486_v58, %v3113_v3 }
 0x1d0   : > { %v1319_v61 = vpop.f32.mrf.mxu0 }
 0x1d1   : > { %v1446_v8 = vmax.f32 %v1414_v59, 0.0  ;;  %v1320_v11 = vadd.f32 %v1319_v61, %v3115_v4  ;;  %v1474_v21 = vpack.c.bf16 %v1448_v0, %v1447_v12  ;;  %v1419_v1 = vadd.f32 %v3126_v14, %v1328_v13 }
 0x1d2   : > { %v2487_v16 = vpop.f32.mrf.mxu0 }
 0x1d3   : > { %v1331_v2 = vadd.f32 %v2487_v16, %v3117_v5  ;;  %v1473_v17 = vpack.c.bf16 %v1446_v8, %v1445_v62  ;;  %v1417_v22 = vadd.f32 %v3126_v14, %v1320_v11  ;;  %v2450_v5 = vpop.f32.mrf.mxu1  ;;  %v1451_v30 = vmax.f32 %v1419_v1, 0.0 }
 0x1d4   : > { %v1322_v20 = vpop.f32.mrf.mxu0 }
 0x1d5   : > { %v1420_v23 = vadd.f32 %v3126_v14, %v1331_v2  ;;  %v1323_v60 = vadd.f32 %v1322_v20, %v3119_v6  ;;  %2528 = vmatprep.mubr.bf16.mxu1 %v1473_v17  ;;  %v1449_v27 = vmax.f32 %v1417_v22, 0.0  ;;  %v1158_v36 = vpop.f32.mrf.mxu1 }
 0x1d6   : > { %v2490_v4 = vpop.f32.mrf.mxu0  ;;  %2529 = vmatmul.mubr.bf16.gmra.mxu1 %v1474_v21 }
 0x1d7   : > { %v1418_v3 = vadd.f32 %v3126_v14, %v1323_v60  ;;  %v1452_v24 = vmax.f32 %v1420_v23, 0.0  ;;  %v1344_v31 = vadd.f32 %v2490_v4, %v3121_v9 }
 0x1d8   : > { %v1335_v26 = vpop.f32.mrf.mxu0 }
 0x1d9   : > { %v1450_v28 = vmax.f32 %v1418_v3, 0.0  ;;  %v1336_v29 = vadd.f32 %v1335_v26, %v3128_v18  ;;  %v1476_v34 = vpack.c.bf16 %v1452_v24, %v1451_v30  ;;  %v1423_v40 = vadd.f32 %v3126_v14, %v1344_v31 }
 0x1da   : > { %v2491_v32 = vpop.f32.mrf.mxu0 }
 0x1db   : > { %v1347_v6 = vadd.f32 %v2491_v32, %v3134_v25  ;;  %v1475_v33 = vpack.c.bf16 %v1450_v28, %v1449_v27  ;;  %v1421_v37 = vadd.f32 %v3126_v14, %v1336_v29  ;;  %v2451_v25 = vpop.f32.mrf.mxu1  ;;  %v1455_v46 = vmax.f32 %v1423_v40, 0.0 }
 0x1dc   : > { %v1338_v10 = vpop.f32.mrf.mxu0 }
 0x1dd   : > { %v1424_v38 = vadd.f32 %v3126_v14, %v1347_v6  ;;  %v1339_v39 = vadd.f32 %v1338_v10, %v3136_v19  ;;  %2532 = vmatprep.mubr.bf16.mxu1 %v1475_v33  ;;  %v1453_v43 = vmax.f32 %v1421_v37, 0.0  ;;  %v1161_v50 = vpop.f32.mrf.mxu1 }
 0x1de   : > { %v2494_v18 = vpop.f32.mrf.mxu0  ;;  %2533 = vmatmul.mubr.bf16.gmra.mxu1 %v1476_v34 }
 0x1df   : > { %v1422_v9 = vadd.f32 %v3126_v14, %v1339_v39  ;;  %v1456_v41 = vmax.f32 %v1424_v38, 0.0  ;;  %v1360_v47 = vadd.f32 %v2494_v18, %v3142_v44  ;;  %v2454_v44 = vpop.f32.mrf.mxu1 }
 0x1e0   : > { %v1351_v42 = vpop.f32.mrf.mxu0 }
 0x1e1   : > { %v1454_v45 = vmax.f32 %v1422_v9, 0.0  ;;  %v1352_v35 = vadd.f32 %v1351_v42, %v1142_v53  ;;  %v1478_v51 = vpack.c.bf16 %v1456_v41, %v1455_v46  ;;  %v1427_v56 = vadd.f32 %v3126_v14, %v1360_v47  ;;  %v1174_v16 = vpop.f32.mrf.mxu1 }
 0x1e2   : > { %v2495_v48 = vpop.f32.mrf.mxu0 }
 0x1e3   : > { %v1363_v63 = vadd.f32 %v2495_v48, %v2447_v7  ;;  %v1477_v49 = vpack.c.bf16 %v1454_v45, %v1453_v43  ;;  %v1425_v52 = vadd.f32 %v3126_v14, %v1352_v35  ;;  %v1459_v62 = vmax.f32 %v1427_v56, 0.0  ;;  %v2455_v4 = vpop.f32.mrf.mxu1 }
 0x1e4   : > { %v1354_v19 = vpop.f32.mrf.mxu0 }
 0x1e5   : > { %v1428_v54 = vadd.f32 %v3126_v14, %v1363_v63  ;;  %v1355_v55 = vadd.f32 %v1354_v19, %v1145_v15  ;;  %2536 = vmatprep.mubr.bf16.mxu1 %v1477_v49  ;;  %v1457_v0 = vmax.f32 %v1425_v52, 0.0  ;;  %v1177_v32 = vpop.f32.mrf.mxu1 }
 0x1e6   : > { %v2498_v57 = vpop.f32.mrf.mxu0  ;;  %2537 = vmatmul.mubr.bf16.gmra.mxu1 %v1478_v51 }
 0x1e7   : > { %v1426_v53 = vadd.f32 %v3126_v14, %v1355_v55  ;;  %v1460_v58 = vmax.f32 %v1428_v54, 0.0  ;;  %v1376_v8 = vadd.f32 %v2498_v57, %v2450_v5 }
 0x1e8   : > { %v1367_v59 = vpop.f32.mrf.mxu0 }
 0x1e9   : > { %v1458_v61 = vmax.f32 %v1426_v53, 0.0  ;;  %v1368_v7 = vadd.f32 %v1367_v59, %v1158_v36  ;;  %v1480_v17 = vpack.c.bf16 %v1460_v58, %v1459_v62  ;;  %v1431_v22 = vadd.f32 %v3126_v14, %v1376_v8 }
 0x1ea   : > { %v2499_v11 = vpop.f32.mrf.mxu0 }
 0x1eb   : > { %v1379_v12 = vadd.f32 %v2499_v11, %v2451_v25  ;;  %v1479_v13 = vpack.c.bf16 %v1458_v61, %v1457_v0  ;;  %v1429_v20 = vadd.f32 %v3126_v14, %v1368_v7  ;;  %v1463_v27 = vmax.f32 %v1431_v22, 0.0  ;;  %v2716_v25 = vld [vmem:[%s3351_s9] sm:$0xff]  }
 0x1ec   : > { %v1370_v2 = vpop.f32.mrf.mxu0  ;;  %2566 = vmatprep.subr.bf16.mxu0 %v2716_v25 }
 0x1ed   : > { %v1432_v21 = vadd.f32 %v3126_v14, %v1379_v12  ;;  %v1371_v15 = vadd.f32 %v1370_v2, %v1161_v50  ;;  %2540 = vmatprep.mubr.bf16.mxu1 %v1479_v13  ;;  %v1461_v24 = vmax.f32 %v1429_v20, 0.0  ;;  %2567 = vmatpush3.bf16.msra.mxu0 %v2716_v25 }
 0x1ee   : > { %v2502_v23 = vpop.f32.mrf.mxu0  ;;  %2541 = vmatmul.mubr.bf16.gmra.mxu1 %v1480_v17 }
 0x1ef   : > { %v1430_v60 = vadd.f32 %v3126_v14, %v1371_v15  ;;  %v1464_v1 = vmax.f32 %v1432_v21, 0.0  ;;  %v1392_v28 = vadd.f32 %v2502_v23, %v2454_v44 }
 0x1f0   : > { %v1383_v3 = vpop.f32.mrf.mxu0 }
 0x1f1   : > { %v1462_v26 = vmax.f32 %v1430_v60, 0.0  ;;  %v1384_v5 = vadd.f32 %v1383_v3, %v1174_v16  ;;  %v1482_v33 = vpack.c.bf16 %v1464_v1, %v1463_v27  ;;  %v1435_v37 = vadd.f32 %v3126_v14, %v1392_v28 }
 0x1f2   : > { %v2503_v29 = vpop.f32.mrf.mxu0 }
 0x1f3   : > { %v1395_v30 = vadd.f32 %v2503_v29, %v2455_v4  ;;  %v1481_v31 = vpack.c.bf16 %v1462_v26, %v1461_v24  ;;  %v1433_v10 = vadd.f32 %v3126_v14, %v1384_v5  ;;  %v1467_v9 = vmax.f32 %v1435_v37, 0.0 }
 0x1f4   : > { %v1386_v6 = vpop.f32.mrf.mxu0 }
 0x1f5   : > { %v1436_v34 = vadd.f32 %v3126_v14, %v1395_v30  ;;  %v1387_v36 = vadd.f32 %v1386_v6, %v1177_v32  ;;  %2544 = vmatprep.mubr.bf16.mxu1 %v1481_v31  ;;  %v1465_v40 = vmax.f32 %v1433_v10, 0.0 }
 0x1f6   : > { %2545 = vmatmul.mubr.bf16.gmra.mxu1 %v1482_v33 }
 0x1f7   : > { %v1434_v38 = vadd.f32 %v3126_v14, %v1387_v36  ;;  %v1468_v39 = vmax.f32 %v1436_v34, 0.0  ;;  %v3183_v14 = vld [vmem:[%s3350_s8] ss:$0 sm:$0xff] }
 0x1f9   : > { %v1466_v18 = vmax.f32 %v1434_v38, 0.0  ;;  %v1484_v42 = vpack.c.bf16 %v1468_v39, %v1467_v9 }
 0x1fb   : > { %v1483_v41 = vpack.c.bf16 %v1466_v18, %v1465_v40 }
 0x1fd   : > { %2548 = vmatprep.mubr.bf16.mxu1 %v1483_v41 }
 0x1fe   : > { %2549 = vmatmul.mubr.bf16.gmra.mxu1 %v1484_v42 }
 0x286   : > { %v2522_v43 = vpop.f32.mrf.mxu1 }
 0x287   : > { %v1599_v48 = vadd.f32 %v2522_v43, %v3183_v14 }
 0x288   : > { %v1590_v45 = vpop.f32.mrf.mxu1 }
 0x289   : > { %v1591_v46 = vadd.f32 %v3183_v14, %v1590_v45  ;;  %v1719_v54 = vmax.f32 %v1599_v48, 0.0 }
 0x28a   : > { %v2523_v35 = vpop.f32.mrf.mxu1 }
 0x28b   : > { %v1602_v47 = vadd.f32 %v2523_v35, %v3183_v14  ;;  %v1717_v51 = vmax.f32 %v1591_v46, 0.0 }
 0x28c   : > { %v1593_v63 = vpop.f32.mrf.mxu1 }
 0x28d   : > { %v1594_v49 = vadd.f32 %v3183_v14, %v1593_v63  ;;  %v1720_v19 = vmax.f32 %v1602_v47, 0.0 }
 0x28e   : > { %v2526_v50 = vpop.f32.mrf.mxu1 }
 0x28f   : > { %v1718_v52 = vmax.f32 %v1594_v49, 0.0  ;;  %v1750_v57 = vpack.c.bf16 %v1720_v19, %v1719_v54  ;;  %v1615_v59 = vadd.f32 %v2526_v50, %v3183_v14 }
 0x290   : > { %v1606_v55 = vpop.f32.mrf.mxu1 }
 0x291   : > { %v1749_v56 = vpack.c.bf16 %v1718_v52, %v1717_v51  ;;  %v1607_v58 = vadd.f32 %v3183_v14, %v1606_v55  ;;  %v1723_v12 = vmax.f32 %v1615_v59, 0.0 }
 0x292   : > { %v2527_v53 = vpop.f32.mrf.mxu1 }
 0x293   : > { %v1618_v44 = vadd.f32 %v2527_v53, %v3183_v14  ;;  %2568 = vmatprep.mubr.bf16.mxu0 %v1749_v56  ;;  %v1721_v8 = vmax.f32 %v1607_v58, 0.0 }
 0x294   : > { %v1609_v0 = vpop.f32.mrf.mxu1  ;;  %2569 = vmatmul.mubr.bf16.vlgmr.msra.gmra.mxu0 %v1750_v57 }
 0x295   : > { %v1610_v61 = vadd.f32 %v3183_v14, %v1609_v0  ;;  %v1724_v7 = vmax.f32 %v1618_v44, 0.0 }
 0x296   : > { %v2530_v62 = vpop.f32.mrf.mxu1 }
 0x297   : > { %v1722_v11 = vmax.f32 %v1610_v61, 0.0  ;;  %v1752_v2 = vpack.c.bf16 %v1724_v7, %v1723_v12  ;;  %v1631_v15 = vadd.f32 %v2530_v62, %v3183_v14 }
 0x298   : > { %v1622_v13 = vpop.f32.mrf.mxu1 }
 0x299   : > { %v1751_v16 = vpack.c.bf16 %v1722_v11, %v1721_v8  ;;  %v1623_v20 = vadd.f32 %v3183_v14, %v1622_v13  ;;  %v1727_v24 = vmax.f32 %v1631_v15, 0.0 }
 0x29a   : > { %v2531_v17 = vpop.f32.mrf.mxu1 }
 0x29b   : > { %v1634_v21 = vadd.f32 %v2531_v17, %v3183_v14  ;;  %2572 = vmatprep.mubr.bf16.mxu0 %v1751_v16  ;;  %v1725_v4 = vmax.f32 %v1623_v20, 0.0 }
 0x29c   : > { %v1625_v22 = vpop.f32.mrf.mxu1  ;;  %2573 = vmatmul.mubr.bf16.gmra.mxu0 %v1752_v2 }
 0x29d   : > { %v1626_v23 = vadd.f32 %v3183_v14, %v1625_v22  ;;  %v1728_v60 = vmax.f32 %v1634_v21, 0.0 }
 0x29e   : > { %v2534_v1 = vpop.f32.mrf.mxu1 }
 0x29f   : > { %v1726_v3 = vmax.f32 %v1626_v23, 0.0  ;;  %v1754_v27 = vpack.c.bf16 %v1728_v60, %v1727_v24  ;;  %v1647_v31 = vadd.f32 %v2534_v1, %v3183_v14 }
 0x2a0   : > { %v1638_v26 = vpop.f32.mrf.mxu1 }
 0x2a1   : > { %v1753_v5 = vpack.c.bf16 %v1726_v3, %v1725_v4  ;;  %v1639_v29 = vadd.f32 %v3183_v14, %v1638_v26  ;;  %v1731_v37 = vmax.f32 %v1647_v31, 0.0 }
 0x2a2   : > { %v2535_v28 = vpop.f32.mrf.mxu1 }
 0x2a3   : > { %v1650_v30 = vadd.f32 %v2535_v28, %v3183_v14  ;;  %2576 = vmatprep.mubr.bf16.mxu0 %v1753_v5  ;;  %v1729_v34 = vmax.f32 %v1639_v29, 0.0 }
 0x2a4   : > { %v1641_v32 = vpop.f32.mrf.mxu1  ;;  %2577 = vmatmul.mubr.bf16.gmra.mxu0 %v1754_v27 }
 0x2a5   : > { %v1642_v6 = vadd.f32 %v3183_v14, %v1641_v32  ;;  %v1732_v33 = vmax.f32 %v1650_v30, 0.0 }
 0x2a6   : > { %v2538_v10 = vpop.f32.mrf.mxu1 }
 0x2a7   : > { %v1730_v36 = vmax.f32 %v1642_v6, 0.0  ;;  %v1756_v40 = vpack.c.bf16 %v1732_v33, %v1731_v37  ;;  %v1663_v42 = vadd.f32 %v2538_v10, %v3183_v14  ;;  %v3221_v6 = vld [vmem:[%s3352_s10] ss:$0 sm:$0xff] }
 0x2a8   : > { %v1654_v38 = vpop.f32.mrf.mxu1 }
 0x2a9   : > { %v1755_v39 = vpack.c.bf16 %v1730_v36, %v1729_v34  ;;  %v1655_v9 = vadd.f32 %v3183_v14, %v1654_v38  ;;  %v1735_v48 = vmax.f32 %v1663_v42, 0.0 }
 0x2aa   : > { %v2539_v18 = vpop.f32.mrf.mxu1 }
 0x2ab   : > { %v1666_v41 = vadd.f32 %v2539_v18, %v3183_v14  ;;  %2580 = vmatprep.mubr.bf16.mxu0 %v1755_v39  ;;  %v1733_v46 = vmax.f32 %v1655_v9, 0.0 }
 0x2ac   : > { %v1657_v25 = vpop.f32.mrf.mxu1  ;;  %2581 = vmatmul.mubr.bf16.gmra.mxu0 %v1756_v40 }
 0x2ad   : > { %v1658_v43 = vadd.f32 %v3183_v14, %v1657_v25  ;;  %v1736_v45 = vmax.f32 %v1666_v41, 0.0 }
 0x2ae   : > { %v2542_v35 = vpop.f32.mrf.mxu1 }
 0x2af   : > { %v1734_v47 = vmax.f32 %v1658_v43, 0.0  ;;  %v1758_v19 = vpack.c.bf16 %v1736_v45, %v1735_v48  ;;  %v1679_v54 = vadd.f32 %v2542_v35, %v3183_v14 }
 0x2b0   : > { %v1670_v63 = vpop.f32.mrf.mxu1 }
 0x2b1   : > { %v1757_v49 = vpack.c.bf16 %v1734_v47, %v1733_v46  ;;  %v1671_v51 = vadd.f32 %v3183_v14, %v1670_v63  ;;  %v1739_v59 = vmax.f32 %v1679_v54, 0.0 }
 0x2b2   : > { %v2543_v50 = vpop.f32.mrf.mxu1 }
 0x2b3   : > { %v1682_v52 = vadd.f32 %v2543_v50, %v3183_v14  ;;  %2584 = vmatprep.mubr.bf16.mxu0 %v1757_v49  ;;  %v1737_v58 = vmax.f32 %v1671_v51, 0.0 }
 0x2b4   : > { %v1673_v55 = vpop.f32.mrf.mxu1  ;;  %2585 = vmatmul.mubr.bf16.gmra.mxu0 %v1758_v19 }
 0x2b5   : > { %v1674_v56 = vadd.f32 %v3183_v14, %v1673_v55  ;;  %v1740_v57 = vmax.f32 %v1682_v52, 0.0 }
 0x2b6   : > { %v2546_v53 = vpop.f32.mrf.mxu1 }
 0x2b7   : > { %v1738_v44 = vmax.f32 %v1674_v56, 0.0  ;;  %v1760_v7 = vpack.c.bf16 %v1740_v57, %v1739_v59  ;;  %v1695_v12 = vadd.f32 %v2546_v53, %v3183_v14 }
 0x2b8   : > { %v1686_v0 = vpop.f32.mrf.mxu1 }
 0x2b9   : > { %v1759_v61 = vpack.c.bf16 %v1738_v44, %v1737_v58  ;;  %v1687_v8 = vadd.f32 %v3183_v14, %v1686_v0  ;;  %v1743_v15 = vmax.f32 %v1695_v12, 0.0 }
 0x2ba   : > { %v2547_v62 = vpop.f32.mrf.mxu1 }
 0x2bb   : > { %v1698_v11 = vadd.f32 %v2547_v62, %v3183_v14  ;;  %2588 = vmatprep.mubr.bf16.mxu0 %v1759_v61  ;;  %v1741_v20 = vmax.f32 %v1687_v8, 0.0 }
 0x2bc   : > { %v1689_v13 = vpop.f32.mrf.mxu1  ;;  %2589 = vmatmul.mubr.bf16.gmra.mxu0 %v1760_v7 }
 0x2bd   : > { %v1690_v16 = vadd.f32 %v3183_v14, %v1689_v13  ;;  %v1744_v2 = vmax.f32 %v1698_v11, 0.0 }
 0x2be   : > { %v2550_v17 = vpop.f32.mrf.mxu1 }
 0x2bf   : > { %v1742_v21 = vmax.f32 %v1690_v16, 0.0  ;;  %v1762_v60 = vpack.c.bf16 %v1744_v2, %v1743_v15  ;;  %v1711_v24 = vadd.f32 %v2550_v17, %v3183_v14 }
 0x2c0   : > { %v1702_v22 = vpop.f32.mrf.mxu1 }
 0x2c1   : > { %v1761_v23 = vpack.c.bf16 %v1742_v21, %v1741_v20  ;;  %v1703_v4 = vadd.f32 %v3183_v14, %v1702_v22  ;;  %v1747_v30 = vmax.f32 %v1711_v24, 0.0 }
 0x2c2   : > { %v2551_v1 = vpop.f32.mrf.mxu1 }
 0x2c3   : > { %v1714_v3 = vadd.f32 %v2551_v1, %v3183_v14  ;;  %2592 = vmatprep.mubr.bf16.mxu0 %v1761_v23  ;;  %v1745_v28 = vmax.f32 %v1703_v4, 0.0 }
 0x2c4   : > { %v1705_v26 = vpop.f32.mrf.mxu1  ;;  %2593 = vmatmul.mubr.bf16.gmra.mxu0 %v1762_v60 }
 0x2c5   : > { %v1706_v5 = vadd.f32 %v3183_v14, %v1705_v26  ;;  %v1748_v27 = vmax.f32 %v1714_v3, 0.0 }
 0x2c7   : > { %v1746_v29 = vmax.f32 %v1706_v5, 0.0  ;;  %v1764_v32 = vpack.c.bf16 %v1748_v27, %v1747_v30 }
 0x2c9   : > { %v1763_v31 = vpack.c.bf16 %v1746_v29, %v1745_v28 }
 0x2cb   : > { %2596 = vmatprep.mubr.bf16.mxu0 %v1763_v31 }
 0x2cc   : > { %2597 = vmatmul.mubr.bf16.gmra.mxu0 %v1764_v32 }
 0x354   : > { %v2570_v33 = vpop.f32.mrf.mxu0 }
 0x355   : > { %v1879_v10 = vadd.f32 %v2570_v33, %v3221_v6 }
 0x356   : > { %v1870_v14 = vpop.f32.mrf.mxu0 }
 0x357   : > { %v1999_v34 = vmax.f32 %v1879_v10, 0.0  ;;  %v1871_v36 = vadd.f32 %v3221_v6, %v1870_v14 }
 0x358   : > { %v2571_v37 = vpop.f32.mrf.mxu0 }
 0x359   : > { %2031 = vst [vmem:[%s3227_s24 + $0x10] sm:$0xff] %v1999_v34  ;;  %v1997_v38 = vmax.f32 %v1871_v36, 0.0  ;;  %v1882_v39 = vadd.f32 %v2571_v37, %v3221_v6 }
 0x35a   : > { %v1873_v40 = vpop.f32.mrf.mxu0 }
 0x35b   : > { %2029 = vst [vmem:[%s3227_s24] sm:$0xff] %v1997_v38  ;;  %v2000_v18 = vmax.f32 %v1882_v39, 0.0  ;;  %v1874_v9 = vadd.f32 %v3221_v6, %v1873_v40 }
 0x35c   : > { %v2574_v41 = vpop.f32.mrf.mxu0 }
 0x35d   : > { %2032 = vst [vmem:[%s3227_s24 + $0x18] sm:$0xff] %v2000_v18  ;;  %v1998_v42 = vmax.f32 %v1874_v9, 0.0  ;;  %v1895_v25 = vadd.f32 %v2574_v41, %v3221_v6 }
 0x35e   : > { %v1886_v43 = vpop.f32.mrf.mxu0 }
 0x35f   : > { %2030 = vst [vmem:[%s3227_s24 + $0x8] sm:$0xff] %v1998_v42  ;;  %v2003_v45 = vmax.f32 %v1895_v25, 0.0  ;;  %v1887_v35 = vadd.f32 %v3221_v6, %v1886_v43 }
 0x360   : > { %v2575_v46 = vpop.f32.mrf.mxu0 }
 0x361   : > { %2035 = vst [vmem:[%s3227_s24 + $0x30] sm:$0xff] %v2003_v45  ;;  %v2001_v47 = vmax.f32 %v1887_v35, 0.0  ;;  %v1898_v48 = vadd.f32 %v2575_v46, %v3221_v6 }
 0x362   : > { %v1889_v63 = vpop.f32.mrf.mxu0 }
 0x363   : > { %2033 = vst [vmem:[%s3227_s24 + $0x20] sm:$0xff] %v2001_v47  ;;  %v2004_v49 = vmax.f32 %v1898_v48, 0.0  ;;  %v1890_v19 = vadd.f32 %v3221_v6, %v1889_v63 }
 0x364   : > { %v2578_v50 = vpop.f32.mrf.mxu0 }
 0x365   : > { %2036 = vst [vmem:[%s3227_s24 + $0x38] sm:$0xff] %v2004_v49  ;;  %v2002_v51 = vmax.f32 %v1890_v19, 0.0  ;;  %v1911_v52 = vadd.f32 %v2578_v50, %v3221_v6 }
 0x366   : > { %v1902_v54 = vpop.f32.mrf.mxu0 }
 0x367   : > { %2034 = vst [vmem:[%s3227_s24 + $0x28] sm:$0xff] %v2002_v51  ;;  %v2007_v55 = vmax.f32 %v1911_v52, 0.0  ;;  %v1903_v56 = vadd.f32 %v3221_v6, %v1902_v54 }
 0x368   : > { %v2579_v57 = vpop.f32.mrf.mxu0 }
 0x369   : > { %2039 = vst [vmem:[%s3227_s24 + $0x50] sm:$0xff] %v2007_v55  ;;  %v2005_v53 = vmax.f32 %v1903_v56, 0.0  ;;  %v1914_v58 = vadd.f32 %v2579_v57, %v3221_v6 }
 0x36a   : > { %v1905_v44 = vpop.f32.mrf.mxu0 }
 0x36b   : > { %2037 = vst [vmem:[%s3227_s24 + $0x40] sm:$0xff] %v2005_v53  ;;  %v2008_v59 = vmax.f32 %v1914_v58, 0.0  ;;  %v1906_v0 = vadd.f32 %v3221_v6, %v1905_v44 }
 0x36c   : > { %v2582_v61 = vpop.f32.mrf.mxu0 }
 0x36d   : > { %2040 = vst [vmem:[%s3227_s24 + $0x58] sm:$0xff] %v2008_v59  ;;  %v2006_v7 = vmax.f32 %v1906_v0, 0.0  ;;  %v1927_v62 = vadd.f32 %v2582_v61, %v3221_v6 }
 0x36e   : > { %v1918_v8 = vpop.f32.mrf.mxu0 }
 0x36f   : > { %2038 = vst [vmem:[%s3227_s24 + $0x48] sm:$0xff] %v2006_v7  ;;  %v2011_v11 = vmax.f32 %v1927_v62, 0.0  ;;  %v1919_v12 = vadd.f32 %v3221_v6, %v1918_v8 }
 0x370   : > { %v2583_v13 = vpop.f32.mrf.mxu0 }
 0x371   : > { %2043 = vst [vmem:[%s3227_s24 + $0x70] sm:$0xff] %v2011_v11  ;;  %v2009_v16 = vmax.f32 %v1919_v12, 0.0  ;;  %v1930_v2 = vadd.f32 %v2583_v13, %v3221_v6 }
 0x372   : > { %v1921_v17 = vpop.f32.mrf.mxu0 }
 0x373   : > { %2041 = vst [vmem:[%s3227_s24 + $0x60] sm:$0xff] %v2009_v16  ;;  %v2012_v20 = vmax.f32 %v1930_v2, 0.0  ;;  %v1922_v21 = vadd.f32 %v3221_v6, %v1921_v17 }
 0x374   : > { %v2586_v15 = vpop.f32.mrf.mxu0 }
 0x375   : > { %2044 = vst [vmem:[%s3227_s24 + $0x78] sm:$0xff] %v2012_v20  ;;  %v2010_v22 = vmax.f32 %v1922_v21, 0.0  ;;  %v1943_v23 = vadd.f32 %v2586_v15, %v3221_v6 }
 0x376   : > { %v1934_v60 = vpop.f32.mrf.mxu0 }
 0x377   : > { %2042 = vst [vmem:[%s3227_s24 + $0x68] sm:$0xff] %v2010_v22  ;;  %v2015_v1 = vmax.f32 %v1943_v23, 0.0  ;;  %v1935_v4 = vadd.f32 %v3221_v6, %v1934_v60 }
 0x378   : > { %v2587_v3 = vpop.f32.mrf.mxu0 }
 0x379   : > { %2047 = vst [vmem:[%s3227_s24 + $0x90] sm:$0xff] %v2015_v1  ;;  %v2013_v24 = vmax.f32 %v1935_v4, 0.0  ;;  %v1946_v26 = vadd.f32 %v2587_v3, %v3221_v6 }
 0x37a   : > { %v1937_v5 = vpop.f32.mrf.mxu0 }
 0x37b   : > { %2045 = vst [vmem:[%s3227_s24 + $0x80] sm:$0xff] %v2013_v24  ;;  %v2016_v27 = vmax.f32 %v1946_v26, 0.0  ;;  %v1938_v28 = vadd.f32 %v3221_v6, %v1937_v5 }
 0x37c   : > { %v2590_v29 = vpop.f32.mrf.mxu0 }
 0x37d   : > { %2048 = vst [vmem:[%s3227_s24 + $0x98] sm:$0xff] %v2016_v27  ;;  %v2014_v30 = vmax.f32 %v1938_v28, 0.0  ;;  %v1959_v31 = vadd.f32 %v2590_v29, %v3221_v6 }
 0x37e   : > { %v1950_v32 = vpop.f32.mrf.mxu0 }
 0x37f   : > { %2046 = vst [vmem:[%s3227_s24 + $0x88] sm:$0xff] %v2014_v30  ;;  %v2019_v33 = vmax.f32 %v1959_v31, 0.0  ;;  %v1951_v10 = vadd.f32 %v3221_v6, %v1950_v32 }
 0x380   : > { %v2591_v14 = vpop.f32.mrf.mxu0 }
 0x381   : > { %2051 = vst [vmem:[%s3227_s24 + $0xb0] sm:$0xff] %v2019_v33  ;;  %v2017_v34 = vmax.f32 %v1951_v10, 0.0  ;;  %v1962_v36 = vadd.f32 %v2591_v14, %v3221_v6 }
 0x382   : > { %v1953_v37 = vpop.f32.mrf.mxu0 }
 0x383   : > { %2049 = vst [vmem:[%s3227_s24 + $0xa0] sm:$0xff] %v2017_v34  ;;  %v2020_v38 = vmax.f32 %v1962_v36, 0.0  ;;  %v1954_v39 = vadd.f32 %v3221_v6, %v1953_v37 }
 0x384   : > { %v2594_v40 = vpop.f32.mrf.mxu0 }
 0x385   : > { %2052 = vst [vmem:[%s3227_s24 + $0xb8] sm:$0xff] %v2020_v38  ;;  %v2018_v18 = vmax.f32 %v1954_v39, 0.0  ;;  %v1975_v9 = vadd.f32 %v2594_v40, %v3221_v6 }
 0x386   : > { %v1966_v41 = vpop.f32.mrf.mxu0 }
 0x387   : > { %2050 = vst [vmem:[%s3227_s24 + $0xa8] sm:$0xff] %v2018_v18  ;;  %v2023_v42 = vmax.f32 %v1975_v9, 0.0  ;;  %v1967_v25 = vadd.f32 %v3221_v6, %v1966_v41 }
 0x388   : > { %v2595_v43 = vpop.f32.mrf.mxu0 }
 0x389   : > { %2055 = vst [vmem:[%s3227_s24 + $0xd0] sm:$0xff] %v2023_v42  ;;  %v2021_v45 = vmax.f32 %v1967_v25, 0.0  ;;  %v1978_v35 = vadd.f32 %v2595_v43, %v3221_v6 }
 0x38a   : > { %v1969_v46 = vpop.f32.mrf.mxu0 }
 0x38b   : > { %2053 = vst [vmem:[%s3227_s24 + $0xc0] sm:$0xff] %v2021_v45  ;;  %v2024_v47 = vmax.f32 %v1978_v35, 0.0  ;;  %v1970_v48 = vadd.f32 %v3221_v6, %v1969_v46 }
 0x38c   : > { %v2598_v63 = vpop.f32.mrf.mxu0 }
 0x38d   : > { %2056 = vst [vmem:[%s3227_s24 + $0xd8] sm:$0xff] %v2024_v47  ;;  %v2022_v49 = vmax.f32 %v1970_v48, 0.0  ;;  %v1991_v19 = vadd.f32 %v2598_v63, %v3221_v6 }
 0x38e   : > { %v1982_v50 = vpop.f32.mrf.mxu0 }
 0x38f   : > { %2054 = vst [vmem:[%s3227_s24 + $0xc8] sm:$0xff] %v2022_v49  ;;  %v2027_v51 = vmax.f32 %v1991_v19, 0.0  ;;  %v1983_v52 = vadd.f32 %v3221_v6, %v1982_v50 }
 0x390   : > { %v2599_v54 = vpop.f32.mrf.mxu0 }
 0x391   : > { %2059 = vst [vmem:[%s3227_s24 + $0xf0] sm:$0xff] %v2027_v51  ;;  %v2025_v55 = vmax.f32 %v1983_v52, 0.0  ;;  %v1994_v56 = vadd.f32 %v2599_v54, %v3221_v6 }
 0x392   : > { %v1985_v57 = vpop.f32.mrf.mxu0 }
 0x393   : > { %2057 = vst [vmem:[%s3227_s24 + $0xe0] sm:$0xff] %v2025_v55  ;;  %v2028_v53 = vmax.f32 %v1994_v56, 0.0  ;;  %v1986_v58 = vadd.f32 %v3221_v6, %v1985_v57 }
 0x395   : > { %2060 = vst [vmem:[%s3227_s24 + $0xf8] sm:$0xff] %v2028_v53  ;;  %v2026_v44 = vmax.f32 %v1986_v58, 0.0 }
 0x397   : > { %2058 = vst [vmem:[%s3227_s24 + $0xe8] sm:$0xff] %v2026_v44 }
 0x398   : > { %2730 = shalt.err (!%p2727_p3)
}
 0x399   : > { %s2731_s14 = scalar_lea.hbm %s3294_s26, 4096  ;;  %s2735_s16 = scalar_lea.hbm %s3353_s11, 8192 }
 0x39a   : > { %p2732_p4 = scmp.ne.s32.totalorder %s3294_s26, %s2731_s14  ;;  %p2736_p9 = scmp.lt.s32.totalorder %s3294_s26, %s3353_s11 }
 0x39b   : > { %p2737_p10 = scmp.lt.s32.totalorder %s2735_s16, %s2731_s14 }
 0x39c   : > { %p2733_p7 = pnand %p2732_p4, %p2880_p5 }
 0x39d   : > { %p2738_p11 = por %p2737_p10, %p2736_p9 }
 0x39e   : > { %p2734_p8 = pneg %p2733_p7 }
 0x3a0   : > { %p2739_p12 = pnand %p2738_p11, %p2734_p8 }
 0x3a2   : > { %2742 = shalt.err (!%p2739_p12)
}
 0x3a3   : > { %s2780_s0 = smov 128   ;;  %s2781_s19 = smov 8  }
 0x3a4   : > { %2608 = dma.vmem_to_hbm [thread:$0]  (%p2880_p5), %s3296_s30, 4096, %s3294_s26, %s3302_s21, %s2780_s0, %s2780_s0, %s2781_s19  }
 0x3a5 PF: > { %p2614_p13 = scmp.ge.s32.totalorder %s2777_s20, 2  ;;  %s2090_s2 = sand.u32 1, %s2765_s17  }
 0x3a6   : > { %s2091_s12 = scalar_lea.sflag [#allocation3], %s2090_s2 }
 0x3a7   : > { %p2611_p0 = pnand %p2614_p13, %p2884_p6 }
 0x3a9   : > { %p2612_p1 = pneg %p2611_p0 }
 0x3ab   : > { %2760 = dma.done.wait (%p2612_p1), %s2091_s12, 4096  }
 0x3ac   : > { %2762 = vsyncadd (%p2612_p1), %s2091_s12, 4294963200  ;;  %s3365_s29 = sld [smem:[#allocation5_spill]]  ;;  %p21_p2 = scmp.ge.s32.totalorder %s2867_s23, 4  }
 0x3ad   : > { %s3366_s19 = sld [smem:[#allocation6_spill]]  ;;  %s3367_s17 = smov %s2769_s18 }
 0x3ae   : > { %s3369_s20 = smov %s2867_s23  ;;  %23 = sbr.rel (!%p21_p2) target bundleno = 6 (0x6), region = 102 }
 0x3b2   : > { %s3368_s18 = smov %s3365_s29 }
 0x3b3   :  { %2096 = vsyncpa [#allocation3], 1 }
 0x3b4   :  { %2098 = vsyncpa [#allocation3 + $0x1], 1 }

</bundles_post_ra>
